<compile_context>
chip_gen: v7x
topology: tpu7x:2x2x1
jax: 0.10.0
libtpu: 0.0.40
codegen_flags: <defaults>
</compile_context>

<pallas_src>
import jax
import jax.numpy as jnp
from jax.experimental import pallas as pl
from jax.experimental.pallas import tpu as pltpu

BN_EPS = 1e-5   # PyTorch BatchNorm1d default eps
LANE = 128      # TPU lane width


# --------------------------- fused forward kernel ---------------------------
def _fused_kernel(x_ref, wb_ref, bb_ref, w1_ref, b1_ref, w2_ref, b2_ref, o_ref):
    # x_ref : [B, C, H*W]        wb_ref: [C, P]        bb_ref: [1, P]
    # w1_ref: [P, A*Hd]  (BN folded)   b1_ref: [1, A*Hd]
    # w2_ref: [A*Hd, Npad] (block-diag, zero-padded to lane multiple)
    # b2_ref: [1, Npad]                 o_ref : [B, Npad]
    #
    # --- surrogate backbone: global average pool + linear projection ---
    pooled = jnp.mean(x_ref[...], axis=-1)                       # [B, C]
    feat = (jnp.dot(pooled, wb_ref[...],
                    preferred_element_type=jnp.float32)
            + bb_ref[...])                                       # [B, P]
    # --- all 40 heads, layer 1 (Linear + folded BatchNorm eval) ---
    h = (jnp.dot(feat.astype(w1_ref.dtype), w1_ref[...],
                 preferred_element_type=jnp.float32)
         + b1_ref[...])                                          # [B, A*Hd]
    # TODO(synk): nn.Dropout(0.15) is identity in eval mode; train-mode torch
    # RNG dropout is not reproduced.
    h = jnp.maximum(h, 0.0)                                      # ReLU
    # --- all 40 heads, layer 2 (block-diagonal Linear, lane-dense output) ---
    o_ref[...] = (jnp.dot(h.astype(w2_ref.dtype), w2_ref[...],
                          preferred_element_type=jnp.float32)
                  + b2_ref[...])                                 # [B, Npad]


# --------------------------- parameter preparation ---------------------------
def prepare_params(params, use_bf16=False):
    """One-time parameter transform (outside the kernel, not per call).

    - Folds eval-mode BatchNorm1d into W1/b1.
    - Flattens the 40 heads' W1 into one lane-dense [P, A*Hd] matrix.
    - Builds a block-diagonal W2 of shape [A*Hd, A*2], zero-padded to a lane
      multiple so the kernel's output is lane-dense (no masked partial stores).
    - Optionally casts the big weight matrices to bf16 (halves parameter DMA
      bytes and matches the bf16 MXU path on v6e/v7x); activations and
      accumulation stay f32 on all generations (v5e VPU has no bf16).
    """
    w1, b1 = params["w1"], params["b1"]                 # [A,P,Hd], [A,Hd]
    gamma, beta = params["gamma"], params["beta"]       # [A,Hd]
    mean, var = params["mean"], params["var"]           # [A,Hd]
    w2, b2 = params["w2"], params["b2"]                 # [A,Hd,2], [A,2]
    A, P, Hd = w1.shape

    # Fold BatchNorm (eval): y = (x - mu) * g / sqrt(v+eps) + beta
    scale = gamma * jax.lax.rsqrt(var + BN_EPS)         # [A, Hd]
    w1f = w1 * scale[:, None, :]                        # [A, P, Hd]
    b1f = (b1 - mean) * scale + beta                    # [A, Hd]

    # Flatten heads: column (a*Hd + h) of w1_flat == w1f[a, :, h]
    w1_flat = jnp.transpose(w1f, (1, 0, 2)).reshape(P, A * Hd)
    b1_flat = b1f.reshape(1, A * Hd)

    # Block-diagonal W2: rows a*Hd:(a+1)*Hd, cols a*2:(a+1)*2 hold w2[a]
    n_out = A * 2
    n_pad = ((n_out + LANE - 1) // LANE) * LANE
    eye = jnp.eye(A, dtype=w2.dtype)
    w2_bd = jnp.einsum("ahk,ab->ahbk", w2, eye).reshape(A * Hd, n_out)
    w2_bd = jnp.pad(w2_bd, ((0, 0), (0, n_pad - n_out)))
    b2_pad = jnp.pad(b2.reshape(1, n_out), ((0, 0), (0, n_pad - n_out)))

    wdt = jnp.bfloat16 if use_bf16 else jnp.float32
    return {
        "wb": params["wb"].astype(jnp.float32),
        "bb": params["bb"].reshape(1, -1).astype(jnp.float32),
        "w1_flat": w1_flat.astype(wdt),
        "b1_flat": b1_flat.astype(jnp.float32),
        "w2_bd": w2_bd.astype(wdt),
        "b2_pad": b2_pad.astype(jnp.float32),
        "A": A,
        "Hd": Hd,
        "n_out": n_out,
        "n_pad": n_pad,
    }


# ------------------------------- forward pass --------------------------------
def face_attr_forward_stacked(x, prep):
    """Returns stacked head outputs of shape [A, B, 2]."""
    B, C, H, W = x.shape
    A, n_out, n_pad = prep["A"], prep["n_out"], prep["n_pad"]
    x2 = x.reshape(B, C, H * W)

    # Everything fits in VMEM trivially (~1.3 MB f32 of parameters), so the
    # whole forward is a single grid step: one launch, no per-head pipeline
    # overhead, no per-head weight DMAs.
    # TODO(synk): for v7x with large batches, add a B-tiled "parallel" grid
    # axis so both TensorCores split the batch; at B=2 it would be overhead.
    out = pl.pallas_call(
        _fused_kernel,
        out_shape=jax.ShapeDtypeStruct((B, n_pad), jnp.float32),
        grid=(1,),
        in_specs=[
            pl.BlockSpec((B, C, H * W), lambda i: (0, 0, 0)),        # x
            pl.BlockSpec(prep["wb"].shape, lambda i: (0, 0)),        # backbone W
            pl.BlockSpec(prep["bb"].shape, lambda i: (0, 0)),        # backbone b
            pl.BlockSpec(prep["w1_flat"].shape, lambda i: (0, 0)),   # W1 (BN folded)
            pl.BlockSpec(prep["b1_flat"].shape, lambda i: (0, 0)),   # b1 (BN folded)
            pl.BlockSpec(prep["w2_bd"].shape, lambda i: (0, 0)),     # W2 block-diag
            pl.BlockSpec(prep["b2_pad"].shape, lambda i: (0, 0)),    # b2 padded
        ],
        out_specs=pl.BlockSpec((B, n_pad), lambda i: (0, 0)),
        compiler_params=pltpu.CompilerParams(
            dimension_semantics=("arbitrary",)),
    )(x2, prep["wb"], prep["bb"], prep["w1_flat"], prep["b1_flat"],
      prep["w2_bd"], prep["b2_pad"])

    # Single reshape/transpose to recover per-head logits: [A, B, 2]
    return out[:, :n_out].reshape(B, A, 2).transpose(1, 0, 2)


def face_attr_forward(x, prep):
    """Match PyTorch API: list of num_attributes tensors of shape [B, 2].

    The split into 40 arrays happens only at this API boundary; all device
    work is done on the stacked array.
    """
    stacked = face_attr_forward_stacked(x, prep)
    return [stacked[a] for a in range(stacked.shape[0])]


# --------------------------- pure-JAX reference ------------------------------
def face_attr_forward_ref(x, params):
    B, C, H, W = x.shape
    pooled = x.reshape(B, C, H * W).mean(-1)
    feat = pooled @ params["wb"] + params["bb"]
    outs = []
    A = params["w1"].shape[0]
    for a in range(A):
        h = feat @ params["w1"][a] + params["b1"][a]
        h = (h - params["mean"][a]) / jnp.sqrt(params["var"][a] + BN_EPS)
        h = h * params["gamma"][a] + params["beta"][a]
        h = jnp.maximum(h, 0.0)
        outs.append(h @ params["w2"][a] + params["b2"][a])
    return outs


if __name__ == "__main__":
    # Small shapes consistent with the forward pass:
    B, C, H, W = 2, 4, 16, 16        # input image batch
    P = 128                          # surrogate "pt_out" backbone feature dim
    Hd = P // 2                      # FC_Block hidden dim
    A = 40                           # num_attributes

    key = jax.random.PRNGKey(0)
    ks = jax.random.split(key, 10)

    x = jax.random.normal(ks[0], (B, C, H, W), dtype=jnp.float32)

    params = {
        "wb": jax.random.normal(ks[1], (C, P), jnp.float32) * 0.1,
        "bb": jax.random.normal(ks[2], (P,), jnp.float32) * 0.1,
        "w1": jax.random.normal(ks[3], (A, P, Hd), jnp.float32) * (1.0 / jnp.sqrt(P)),
        "b1": jax.random.normal(ks[4], (A, Hd), jnp.float32) * 0.05,
        "gamma": 1.0 + 0.1 * jax.random.normal(ks[5], (A, Hd), jnp.float32),
        "beta": 0.1 * jax.random.normal(ks[6], (A, Hd), jnp.float32),
        "mean": 0.1 * jax.random.normal(ks[7], (A, Hd), jnp.float32),
        "var": 0.5 + jax.random.uniform(ks[8], (A, Hd), jnp.float32),  # positive
        "w2": jax.random.normal(ks[9], (A, Hd, 2), jnp.float32) * (1.0 / jnp.sqrt(Hd)),
        "b2": jnp.zeros((A, 2), jnp.float32),
    }

    # One-time parameter transform (BN fold, head flattening, block-diag W2).
    # use_bf16=True halves weight DMA bytes on v6e/v7x; kept f32 here so the
    # numerical check against the f32 reference stays within tight tolerance.
    prep = prepare_params(params, use_bf16=False)

    stacked = face_attr_forward_stacked(x, prep)
    stacked = jax.block_until_ready(stacked)
    outs = [stacked[a] for a in range(A)]

    refs = face_attr_forward_ref(x, params)
    for o, r in zip(outs, refs):
        assert o.shape == (B, 2) and o.dtype == jnp.float32
        assert jnp.allclose(o, r, atol=1e-4, rtol=1e-4)

    print("KERNEL_OK")
</pallas_src>

<mosaic_0001>
module attributes {stable_mosaic.version = 11 : i64} {
  func.func @_fused_kernel(%arg0: i32, %arg1: memref<2x4x256xf32, #tpu.memory_space<vmem>>, %arg2: memref<4x128xf32, #tpu.memory_space<vmem>>, %arg3: memref<1x128xf32, #tpu.memory_space<vmem>>, %arg4: memref<128x2560xf32, #tpu.memory_space<vmem>>, %arg5: memref<1x2560xf32, #tpu.memory_space<vmem>>, %arg6: memref<2560x128xf32, #tpu.memory_space<vmem>>, %arg7: memref<1x128xf32, #tpu.memory_space<vmem>>, %arg8: memref<2x128xf32, #tpu.memory_space<vmem>>) attributes {dimension_semantics = [#tpu.dimension_semantics<arbitrary>], iteration_bounds = array<i64: 1>, scalar_prefetch = 0 : i64, scratch_operands = 0 : i64, tpu.core_type = #tpu.core_type<tc>, window_params = [{pipeline_mode = #tpu.pipeline_mode<synchronous>, transform_indices = @transform_0, window_bounds = array<i64: 2, 4, 256>}, {pipeline_mode = #tpu.pipeline_mode<synchronous>, transform_indices = @transform_1, window_bounds = array<i64: 4, 128>}, {pipeline_mode = #tpu.pipeline_mode<synchronous>, transform_indices = @transform_2, window_bounds = array<i64: 1, 128>}, {pipeline_mode = #tpu.pipeline_mode<synchronous>, transform_indices = @transform_3, window_bounds = array<i64: 128, 2560>}, {pipeline_mode = #tpu.pipeline_mode<synchronous>, transform_indices = @transform_4, window_bounds = array<i64: 1, 2560>}, {pipeline_mode = #tpu.pipeline_mode<synchronous>, transform_indices = @transform_5, window_bounds = array<i64: 2560, 128>}, {pipeline_mode = #tpu.pipeline_mode<synchronous>, transform_indices = @transform_6, window_bounds = array<i64: 1, 128>}, {pipeline_mode = #tpu.pipeline_mode<synchronous>, transform_indices = @transform_7, window_bounds = array<i64: 2, 128>}]} {
    %c0 = arith.constant 0 : index
    %c0_0 = arith.constant 0 : index
    %c0_1 = arith.constant 0 : index
    %0 = vector.load %arg1[%c0, %c0_0, %c0_1] : memref<2x4x256xf32, #tpu.memory_space<vmem>>, vector<2x4x256xf32>
    %cst = arith.constant dense<0.000000e+00> : vector<2x4xf32>
    %1 = vector.multi_reduction <add>, %0, %cst [2] : vector<2x4x256xf32> to vector<2x4xf32>
    %cst_2 = arith.constant 2.560000e+02 : f32
    %2 = vector.broadcast %cst_2 : f32 to vector<2x4xf32>
    %3 = arith.divf %1, %2 : vector<2x4xf32>
    %c0_3 = arith.constant 0 : index
    %c0_4 = arith.constant 0 : index
    %4 = vector.load %arg2[%c0_3, %c0_4] : memref<4x128xf32, #tpu.memory_space<vmem>>, vector<4x128xf32>
    %cst_5 = arith.constant dense<0.000000e+00> : vector<2x128xf32>
    %5 = tpu.matmul %3, %4, %cst_5 {dimension_numbers = #tpu.dot_dimension_numbers<[1], [0], [0], [1], [0, 0, 1, 1], [], []>} : vector<2x4xf32>, vector<4x128xf32>, vector<2x128xf32> -> vector<2x128xf32>
    %c0_6 = arith.constant 0 : index
    %c0_7 = arith.constant 0 : index
    %6 = vector.load %arg3[%c0_6, %c0_7] : memref<1x128xf32, #tpu.memory_space<vmem>>, vector<1x128xf32>
    %7 = vector.broadcast %6 : vector<1x128xf32> to vector<2x128xf32>
    %8 = arith.addf %5, %7 : vector<2x128xf32>
    %c0_8 = arith.constant 0 : index
    %c0_9 = arith.constant 0 : index
    %9 = vector.load %arg4[%c0_8, %c0_9] : memref<128x2560xf32, #tpu.memory_space<vmem>>, vector<128x2560xf32>
    %cst_10 = arith.constant dense<0.000000e+00> : vector<2x2560xf32>
    %10 = tpu.matmul %8, %9, %cst_10 {dimension_numbers = #tpu.dot_dimension_numbers<[1], [0], [0], [1], [0, 0, 1, 1], [], []>} : vector<2x128xf32>, vector<128x2560xf32>, vector<2x2560xf32> -> vector<2x2560xf32>
    %c0_11 = arith.constant 0 : index
    %c0_12 = arith.constant 0 : index
    %11 = vector.load %arg5[%c0_11, %c0_12] : memref<1x2560xf32, #tpu.memory_space<vmem>>, vector<1x2560xf32>
    %12 = vector.broadcast %11 : vector<1x2560xf32> to vector<2x2560xf32>
    %13 = arith.addf %10, %12 : vector<2x2560xf32>
    %cst_13 = arith.constant 0.000000e+00 : f32
    %14 = vector.broadcast %cst_13 : f32 to vector<2x2560xf32>
    %15 = arith.maximumf %13, %14 : vector<2x2560xf32>
    %c0_14 = arith.constant 0 : index
    %c0_15 = arith.constant 0 : index
    %16 = vector.load %arg6[%c0_14, %c0_15] : memref<2560x128xf32, #tpu.memory_space<vmem>>, vector<2560x128xf32>
    %cst_16 = arith.constant dense<0.000000e+00> : vector<2x128xf32>
    %17 = tpu.matmul %15, %16, %cst_16 {dimension_numbers = #tpu.dot_dimension_numbers<[1], [0], [0], [1], [0, 0, 1, 1], [], []>} : vector<2x2560xf32>, vector<2560x128xf32>, vector<2x128xf32> -> vector<2x128xf32>
    %c0_17 = arith.constant 0 : index
    %c0_18 = arith.constant 0 : index
    %18 = vector.load %arg7[%c0_17, %c0_18] : memref<1x128xf32, #tpu.memory_space<vmem>>, vector<1x128xf32>
    %19 = vector.broadcast %18 : vector<1x128xf32> to vector<2x128xf32>
    %20 = arith.addf %17, %19 : vector<2x128xf32>
    %c0_19 = arith.constant 0 : index
    %c0_20 = arith.constant 0 : index
    %21 = vector.load %arg8[%c0_19, %c0_20] : memref<2x128xf32, #tpu.memory_space<vmem>>, vector<2x128xf32>
    tpu.vector_store %arg8[%c0_19, %c0_20], %20 {strides = array<i32>} : memref<2x128xf32, #tpu.memory_space<vmem>>, vector<2x128xf32>,
    return
  }
  func.func @transform_0(%arg0: i32) -> (i32, i32, i32) {
    %c0_i32 = arith.constant 0 : i32
    %c0_i32_0 = arith.constant 0 : i32
    %c0_i32_1 = arith.constant 0 : i32
    %c0_i32_2 = arith.constant 0 : i32
    return %c0_i32, %c0_i32_0, %c0_i32_1 : i32, i32, i32
  }
  func.func @transform_1(%arg0: i32) -> (i32, i32) {
    %c0_i32 = arith.constant 0 : i32
    %c0_i32_0 = arith.constant 0 : i32
    %c0_i32_1 = arith.constant 0 : i32
    return %c0_i32, %c0_i32_0 : i32, i32
  }
  func.func @transform_2(%arg0: i32) -> (i32, i32) {
    %c0_i32 = arith.constant 0 : i32
    %c0_i32_0 = arith.constant 0 : i32
    %c0_i32_1 = arith.constant 0 : i32
    return %c0_i32, %c0_i32_0 : i32, i32
  }
  func.func @transform_3(%arg0: i32) -> (i32, i32) {
    %c0_i32 = arith.constant 0 : i32
    %c0_i32_0 = arith.constant 0 : i32
    %c0_i32_1 = arith.constant 0 : i32
    return %c0_i32, %c0_i32_0 : i32, i32
  }
  func.func @transform_4(%arg0: i32) -> (i32, i32) {
    %c0_i32 = arith.constant 0 : i32
    %c0_i32_0 = arith.constant 0 : i32
    %c0_i32_1 = arith.constant 0 : i32
    return %c0_i32, %c0_i32_0 : i32, i32
  }
  func.func @transform_5(%arg0: i32) -> (i32, i32) {
    %c0_i32 = arith.constant 0 : i32
    %c0_i32_0 = arith.constant 0 : i32
    %c0_i32_1 = arith.constant 0 : i32
    return %c0_i32, %c0_i32_0 : i32, i32
  }
  func.func @transform_6(%arg0: i32) -> (i32, i32) {
    %c0_i32 = arith.constant 0 : i32
    %c0_i32_0 = arith.constant 0 : i32
    %c0_i32_1 = arith.constant 0 : i32
    return %c0_i32, %c0_i32_0 : i32, i32
  }
  func.func @transform_7(%arg0: i32) -> (i32, i32) {
    %c0_i32 = arith.constant 0 : i32
    %c0_i32_0 = arith.constant 0 : i32
    %c0_i32_1 = arith.constant 0 : i32
    return %c0_i32, %c0_i32_0 : i32, i32
  }
}

</mosaic_0001>

<bundles_post_ra>
// kernel: tpu_custom_call.1
= control target key start
LH: loop header
LB: loop body
LE: loop exit
PB: predicated region body
PF: predicated region fallthrough
CT: control target
= control target key end

     0   :  { %12 = vsyncpa [#allocation3], 0  ;;  %s3899_s0 = inlined_call_operand.hbm [shape: f32[2,4,256], index: 0, kind: input, shape index: {}]   ;;  %s3900_s1 = inlined_call_operand.hbm [shape: f32[4,128], index: 1, kind: input, shape index: {}]   ;;  %s3901_s2 = inlined_call_operand.hbm [shape: f32[1,128], index: 2, kind: input, shape index: {}]   ;;  %s3902_s3 = inlined_call_operand.hbm [shape: f32[128,2560], index: 3, kind: input, shape index: {}]   ;;  %s3903_s4 = inlined_call_operand.hbm [shape: f32[1,2560], index: 4, kind: input, shape index: {}]   ;;  %s3904_s5 = inlined_call_operand.hbm [shape: f32[2560,128], index: 5, kind: input, shape index: {}]   ;;  %s3905_s6 = inlined_call_operand.hbm [shape: f32[1,128], index: 6, kind: input, shape index: {}]   ;;  %s3906_s7 = inlined_call_operand.hbm [shape: f32[2,128], index: 7, kind: output, shape index: {}]  }
   0x1   :  { %13 = vsyncpa [#allocation6], 0 }
   0x2   :  { %14 = vsyncpa [#allocation9], 0 }
   0x3   :  { %15 = vsyncpa [#allocation12], 0 }
   0x4   :  { %16 = vsyncpa [#allocation4], 0  ;;  %s3639_s24 = smov [#allocation5]   ;;  %s3640_s26 = smov [#allocation8]  }
   0x5   :  { %s35_s25 = sshll.u32 %s3639_s24, 4  ;;  %s54_s27 = sshll.u32 %s3640_s26, 4  ;;  %s36_s25 = int_to_ptr.vmem [resolvable:$true] %s35_s25  ;;  %s3693_s27 = int_to_ptr.vmem [resolvable:$true] %s54_s27 }
   0x6   :  { %s3453_s30 = scalar_lea.hbm %s3900_s1, 64 }
   0x7   :  { %p3454_p0 = scmp.ne.s32.totalorder %s3900_s1, %s3453_s30  ;;  %p3457_p1 = scmp.lt.u32.totalorder %s3453_s30, %s3900_s1 }
   0x9   :  { %p3459_p2 = pnand %p3457_p1, %p3454_p0 }
   0xb   :  { %3462 = shalt.err (!%p3459_p2)
}
   0xc   :  { %s3463_s12 = scalar_lea.vmem %s36_s25, 64  ;;  %p3468_p4 = scmp.lt.s32.totalorder %s36_s25, %s36_s25 }
   0xd   :  { %p3464_p3 = scmp.ne.s32.totalorder %s36_s25, %s3463_s12  ;;  %p3469_p5 = scmp.lt.s32.totalorder %s3463_s12, %s3463_s12 }
   0xf   :  { %p3470_p6 = por %p3469_p5, %p3468_p4 }
  0x11   :  { %p3471_p7 = pnand %p3470_p6, %p3464_p3 }
  0x13   :  { %3474 = shalt.err (!%p3471_p7)
}
  0x14   :  { %38 = dma.hbm_to_vmem [thread:$0]  %s3900_s1, 64, %s36_s25, [#allocation6]  }
  0x15   :  { %s3475_s17 = scalar_lea.hbm %s3902_s3, 40960 }
  0x16   :  { %p3476_p8 = scmp.ne.s32.totalorder %s3902_s3, %s3475_s17  ;;  %p3479_p9 = scmp.lt.u32.totalorder %s3475_s17, %s3902_s3 }
  0x18   :  { %p3481_p10 = pnand %p3479_p9, %p3476_p8 }
  0x1a   :  { %3484 = shalt.err (!%p3481_p10)
}
  0x1b   :  { %s3485_s22 = scalar_lea.vmem %s3693_s27, 40960  ;;  %p3490_p12 = scmp.lt.s32.totalorder %s3693_s27, %s3693_s27 }
  0x1c   :  { %p3486_p11 = scmp.ne.s32.totalorder %s3693_s27, %s3485_s22  ;;  %p3491_p13 = scmp.lt.s32.totalorder %s3485_s22, %s3485_s22 }
  0x1e   :  { %p3492_p0 = por %p3491_p13, %p3490_p12 }
  0x20   :  { %p3493_p1 = pnand %p3492_p0, %p3486_p11 }
  0x22   :  { %3496 = shalt.err (!%p3493_p1)
}
  0x23   :  { %s3641_s1 = smov 2560   ;;  %s3642_s23 = smov 160  }
  0x24   :  { %60 = dma.hbm_to_vmem [thread:$0]  %s3902_s3, 40960, %s3693_s27, [#allocation9], %s3641_s1, %s3641_s1, %s3642_s23  }
  0x25   :  { %s3643_s26 = smov [#allocation11]   ;;  %s3644_s29 = smov [#allocation2]  }
  0x26   :  { %s76_s28 = sshll.u32 %s3643_s26, 4  ;;  %s22_s30 = sshll.u32 %s3644_s29, 4  ;;  %s77_s28 = int_to_ptr.vmem [resolvable:$true] %s76_s28  ;;  %s3724_s30 = int_to_ptr.vmem [resolvable:$true] %s22_s30 }
  0x27   :  { %s3497_s10 = scalar_lea.hbm %s3904_s5, 40960 }
  0x28   :  { %p3498_p2 = scmp.ne.s32.totalorder %s3904_s5, %s3497_s10  ;;  %p3501_p3 = scmp.lt.u32.totalorder %s3497_s10, %s3904_s5 }
  0x2a   :  { %p3503_p4 = pnand %p3501_p3, %p3498_p2 }
  0x2c   :  { %3506 = shalt.err (!%p3503_p4)
}
  0x2d   :  { %s3507_s3 = scalar_lea.vmem %s77_s28, 40960  ;;  %p3512_p6 = scmp.lt.s32.totalorder %s77_s28, %s77_s28 }
  0x2e   :  { %p3508_p5 = scmp.ne.s32.totalorder %s77_s28, %s3507_s3  ;;  %p3513_p7 = scmp.lt.s32.totalorder %s3507_s3, %s3507_s3 }
  0x30   :  { %p3514_p8 = por %p3513_p7, %p3512_p6 }
  0x32   :  { %p3515_p9 = pnand %p3514_p8, %p3508_p5 }
  0x34   :  { %3518 = shalt.err (!%p3515_p9)
}
  0x35   :  { %s3645_s27 = smov 128   ;;  %s3646_s15 = smov 8  }
  0x36   :  { %82 = dma.hbm_to_vmem [thread:$0]  %s3904_s5, 40960, %s77_s28, [#allocation12], %s3645_s27, %s3645_s27, %s3646_s15  }
  0x37   :  { %s3519_s20 = scalar_lea.hbm %s3899_s0, 256 }
  0x38   :  { %p3520_p10 = scmp.ne.s32.totalorder %s3899_s0, %s3519_s20  ;;  %p3523_p11 = scmp.lt.u32.totalorder %s3519_s20, %s3899_s0 }
  0x3a   :  { %p3525_p12 = pnand %p3523_p11, %p3520_p10 }
  0x3c   :  { %3528 = shalt.err (!%p3525_p12)
}
  0x3d   :  { %s3529_s24 = scalar_lea.vmem %s3724_s30, 256  ;;  %p3534_p0 = scmp.lt.s32.totalorder %s3724_s30, %s3724_s30 }
  0x3e   :  { %p3530_p13 = scmp.ne.s32.totalorder %s3724_s30, %s3529_s24  ;;  %p3535_p1 = scmp.lt.s32.totalorder %s3529_s24, %s3529_s24 }
  0x40   :  { %p3536_p2 = por %p3535_p1, %p3534_p0 }
  0x42   :  { %p3537_p3 = pnand %p3536_p2, %p3530_p13 }
  0x44   :  { %3540 = shalt.err (!%p3537_p3)
}
  0x45   :  { %28 = dma.hbm_to_vmem [thread:$0]  %s3899_s0, 256, %s3724_s30, [#allocation3], %s3645_s27, %s3645_s27, %s3646_s15  }
  0x46   :  { %s3647_s26 = smov [#allocation7]   ;;  %s3648_s29 = smov [#allocation10]  }
  0x47   :  { %s45_s28 = sshll.u32 %s3647_s26, 4  ;;  %s67_s8 = sshll.u32 %s3648_s29, 4  ;;  %s46_s28 = int_to_ptr.vmem [resolvable:$true] %s45_s28  ;;  %s68_s8 = int_to_ptr.vmem [resolvable:$true] %s67_s8 }
  0x48   :  { %s3541_s11 = scalar_lea.hbm %s3901_s2, 16 }
  0x49   :  { %p3542_p4 = scmp.ne.s32.totalorder %s3901_s2, %s3541_s11  ;;  %p3545_p5 = scmp.lt.u32.totalorder %s3541_s11, %s3901_s2 }
  0x4b   :  { %p3547_p6 = pnand %p3545_p5, %p3542_p4 }
  0x4d   :  { %3550 = shalt.err (!%p3547_p6)
}
  0x4e   :  { %s3551_s0 = scalar_lea.vmem %s46_s28, 16  ;;  %s3555_s30 = scalar_lea.vmem %s46_s28, 32 }
  0x4f   :  { %p3552_p7 = scmp.ne.s32.totalorder %s46_s28, %s3551_s0  ;;  %p3556_p8 = scmp.lt.s32.totalorder %s46_s28, %s46_s28 }
  0x50   :  { %p3557_p9 = scmp.lt.s32.totalorder %s3555_s30, %s3551_s0 }
  0x52   :  { %p3558_p10 = por %p3557_p9, %p3556_p8 }
  0x54   :  { %p3559_p11 = pnand %p3558_p10, %p3552_p7 }
  0x56   :  { %3562 = shalt.err (!%p3559_p11)
}
  0x57   :  { %48 = dma.hbm_to_vmem [thread:$0]  %s3901_s2, 16, %s46_s28, [#allocation6]  }
  0x58   :  { %s3563_s18 = scalar_lea.hbm %s3903_s4, 320 }
  0x59   :  { %p3564_p12 = scmp.ne.s32.totalorder %s3903_s4, %s3563_s18  ;;  %p3567_p13 = scmp.lt.u32.totalorder %s3563_s18, %s3903_s4 }
  0x5b   :  { %p3569_p0 = pnand %p3567_p13, %p3564_p12 }
  0x5d   :  { %3572 = shalt.err (!%p3569_p0)
}
  0x5e   :  { %s3573_s1 = scalar_lea.vmem %s68_s8, 320  ;;  %p3578_p2 = scmp.lt.s32.totalorder %s68_s8, %s68_s8 }
  0x5f   :  { %p3574_p1 = scmp.ne.s32.totalorder %s68_s8, %s3573_s1  ;;  %p3579_p3 = scmp.lt.s32.totalorder %s3573_s1, %s3573_s1 }
  0x61   :  { %p3580_p4 = por %p3579_p3, %p3578_p2 }
  0x63   :  { %p3581_p5 = pnand %p3580_p4, %p3574_p1 }
  0x65   :  { %3584 = shalt.err (!%p3581_p5)
}
  0x66   :  { %70 = dma.hbm_to_vmem [thread:$0]  %s3903_s4, 320, %s68_s8, [#allocation9]  }
  0x67   :  { %s3649_s24 = smov [#allocation13]   ;;  %s3585_s28 = scalar_lea.hbm %s3905_s6, 16 }
  0x68   :  { %s89_s5 = sshll.u32 %s3649_s24, 4  ;;  %p3586_p6 = scmp.ne.s32.totalorder %s3905_s6, %s3585_s28  ;;  %s90_s5 = int_to_ptr.vmem [resolvable:$true] %s89_s5 }
  0x69   :  { %p3589_p7 = scmp.lt.u32.totalorder %s3585_s28, %s3905_s6 }
  0x6b   :  { %p3591_p8 = pnand %p3589_p7, %p3586_p6 }
  0x6d   :  { %3594 = shalt.err (!%p3591_p8)
}
  0x6e   :  { %s3595_s12 = scalar_lea.vmem %s90_s5, 16  ;;  %s3599_s4 = scalar_lea.vmem %s90_s5, 32 }
  0x6f   :  { %p3596_p9 = scmp.ne.s32.totalorder %s90_s5, %s3595_s12  ;;  %p3600_p10 = scmp.lt.s32.totalorder %s90_s5, %s90_s5 }
  0x70   :  { %p3601_p11 = scmp.lt.s32.totalorder %s3599_s4, %s3595_s12 }
  0x72   :  { %p3602_p12 = por %p3601_p11, %p3600_p10 }
  0x74   :  { %p3603_p13 = pnand %p3602_p12, %p3596_p9 }
  0x76   :  { %3606 = shalt.err (!%p3603_p13)
}
  0x77   :  { %92 = dma.hbm_to_vmem [thread:$0]  %s3905_s6, 16, %s90_s5, [#allocation12]  }
  0x78   :  { %3629 = dma.done.wait [#allocation3], 256  }
  0x79   :  { %3630 = vsyncadd [#allocation3], 4294967040 }
  0x7a   :  { %3631 = dma.done.wait [#allocation6], 80  }
  0x7b   :  { %3632 = vsyncadd [#allocation6], 4294967216 }
  0x7c   :  { %3633 = dma.done.wait [#allocation9], 41280  }
  0x7d   :  { %3634 = vsyncadd [#allocation9], 4294926016 }
  0x7e   :  { %3635 = dma.done.wait [#allocation12], 40976  }
  0x7f   :  { %3636 = vsyncadd [#allocation12], 4294926320  ;;  %vm122_vm0 = vcmask 1043456   ;;  %v114_v0 = vld [vmem:[#allocation2] sm:$0xff]  ;;  %v115_v1 = vld [vmem:[#allocation2 + $0x8] sm:$0xff]  ;;  %v3650_v11 = vmov 0.0   ;;  %v146_v63 = vlaneseq }
  0x80   :  { %v118_v2 = vcombine.high %v114_v0, %v114_v0  ;;  %v123_v3 = vsel %vm122_vm0, %v114_v0, 0.0  ;;  %v119_v4 = vcombine.high %v115_v1, %v115_v1  ;;  %v128_v6 = vsel %vm122_vm0, %v115_v1, 0.0  ;;  %v136_v10 = vld [vmem:[#allocation5] sm:$0xf]  ;;  %2792 = vmatprep.subr.mxu0 %v3650_v11  ;;  %724 = vmatprep.mubr.f32.mxu1 %v3650_v11  ;;  %v235_v12 = vld [vmem:[#allocation8 + $0x8] sm:$0xff]  ;;  %v234_v17 = vld [vmem:[#allocation8] sm:$0xff] }
  0x81   :  { %vm3651_vm1 = vmmov 0   ;;  %2793 = vmatpush3.msk.msra.mxu0 %vm122_vm0, %v136_v10  ;;  %v255_v13 = vld [vmem:[#allocation8 + $0xa8] sm:$0xff]  ;;  %v237_v14 = vld [vmem:[#allocation8 + $0x18] sm:$0xff]  ;;  %v254_v18 = vld [vmem:[#allocation8 + $0xa0] sm:$0xff]  ;;  %v147_v0 = vand.u32 127, %v146_v63  ;;  %v3799_v1 = vshrl.u32 %v146_v63, 7 }
  0x82   :  { %v124_v5 = vsel %vm122_vm0, %v118_v2, 0.0  ;;  %v129_v7 = vsel %vm122_vm0, %v119_v4, 0.0  ;;  %2794 = vmatprep.mubr.msk.f32.mxu0 %vm3651_vm1, %v3650_v11  ;;  %v2797_v15 = vpack.c.bf16 %v255_v13, %v235_v12  ;;  %v257_v16 = vld [vmem:[#allocation8 + $0xb8] sm:$0xff]  ;;  %v2799_v20 = vpack.c.bf16 %v254_v18, %v234_v17  ;;  %v275_v21 = vld [vmem:[#allocation8 + $0x148] sm:$0xff]  ;;  %v274_v24 = vld [vmem:[#allocation8 + $0x140] sm:$0xff]  ;;  %s3652_s6 = smov [#allocation14]  }
  0x83   :  { %v125_v8 = vadd.f32 %v124_v5, %v123_v3  ;;  %v130_v9 = vadd.f32 %v129_v7, %v128_v6  ;;  %v2829_v19 = vpack.c.bf16 %v257_v16, %v237_v14  ;;  %v295_v22 = vld [vmem:[#allocation8 + $0x1e8] sm:$0xff]  ;;  %v294_v25 = vld [vmem:[#allocation8 + $0x1e0] sm:$0xff]  ;;  %v150_v3 = vsub.s32 %v147_v0, %v3799_v1  ;;  %v236_v6 = vld [vmem:[#allocation8 + $0x10] sm:$0xff]  ;;  %s2424_s14 = sshll.u32 %s3652_s6, 4  ;;  %s2425_s14 = int_to_ptr.vmem [resolvable:$true] %s2424_s14 }
  0x84   :  { %2798 = vmatprep.subr.bf16.mxu1 %v2797_v15  ;;  %v2801_v23 = vpack.c.bf16 %v295_v22, %v275_v21  ;;  %v2803_v26 = vpack.c.bf16 %v294_v25, %v274_v24  ;;  %v315_v27 = vld [vmem:[#allocation8 + $0x288] sm:$0xff]  ;;  %v314_v30 = vld [vmem:[#allocation8 + $0x280] sm:$0xff]  ;;  %v256_v7 = vld [vmem:[#allocation8 + $0xb0] sm:$0xff]  ;;  %vm156_vm2 = vcmask 1041409   ;;  %vm158_vm3 = vcmask 31744   ;;  %s3607_s3 = scalar_lea.vmem %s2425_s14, 32  ;;  %p3612_p1 = scmp.lt.s32.totalorder %s2425_s14, %s2425_s14 }
  0x85   :  { %126 = vadd.xlane.f32.xlu0 %v125_v8  ;;  %2830 = vmatprep.subr.bf16.mxu0 %v2829_v19  ;;  %v335_v28 = vld [vmem:[#allocation8 + $0x328] sm:$0xff]  ;;  %v334_v31 = vld [vmem:[#allocation8 + $0x320] sm:$0xff]  ;;  %v297_v10 = vld [vmem:[#allocation8 + $0x1f8] sm:$0xff]  ;;  %v2831_v14 = vpack.c.bf16 %v256_v7, %v236_v6  ;;  %p3608_p0 = scmp.ne.s32.totalorder %s2425_s14, %s3607_s3  ;;  %p3613_p2 = scmp.lt.s32.totalorder %s3607_s3, %s3607_s3 }
  0x86   :  { %2800 = vmatpush1.bf16.msra.mxu1 %v2799_v20  ;;  %v2805_v29 = vpack.c.bf16 %v335_v28, %v315_v27  ;;  %v2807_v32 = vpack.c.bf16 %v334_v31, %v314_v30  ;;  %v355_v33 = vld [vmem:[#allocation8 + $0x3c8] sm:$0xff]  ;;  %v354_v36 = vld [vmem:[#allocation8 + $0x3c0] sm:$0xff]  ;;  %v276_v16 = vld [vmem:[#allocation8 + $0x150] sm:$0xff] }
  0x87   :  { %2802 = vmatprep.subr.bf16.mxu1 %v2801_v23  ;;  %v375_v34 = vld [vmem:[#allocation8 + $0x468] sm:$0xff]  ;;  %v374_v37 = vld [vmem:[#allocation8 + $0x460] sm:$0xff]  ;;  %v296_v17 = vld [vmem:[#allocation8 + $0x1f0] sm:$0xff]  ;;  %p3614_p3 = por %p3613_p2, %p3612_p1 }
  0x88   :  { %v2809_v35 = vpack.c.bf16 %v375_v34, %v355_v33  ;;  %v2811_v38 = vpack.c.bf16 %v374_v37, %v354_v36  ;;  %v395_v39 = vld [vmem:[#allocation8 + $0x508] sm:$0xff]  ;;  %v394_v42 = vld [vmem:[#allocation8 + $0x500] sm:$0xff]  ;;  %v317_v19 = vld [vmem:[#allocation8 + $0x298] sm:$0xff]  ;;  %v2835_v21 = vpack.c.bf16 %v296_v17, %v276_v16 }
  0x89   :  { %131 = vadd.xlane.f32.xlu0 %v130_v9  ;;  %v415_v40 = vld [vmem:[#allocation8 + $0x5a8] sm:$0xff]  ;;  %v414_v43 = vld [vmem:[#allocation8 + $0x5a0] sm:$0xff]  ;;  %v277_v9 = vld [vmem:[#allocation8 + $0x158] sm:$0xff]  ;;  %p3615_p4 = pnand %p3614_p3, %p3608_p0 }
  0x8a   :  { %2804 = vmatpush1.bf16.msra.mxu1 %v2803_v26  ;;  %v2813_v41 = vpack.c.bf16 %v415_v40, %v395_v39  ;;  %v2815_v44 = vpack.c.bf16 %v414_v43, %v394_v42  ;;  %v435_v45 = vld [vmem:[#allocation8 + $0x648] sm:$0xff]  ;;  %v434_v48 = vld [vmem:[#allocation8 + $0x640] sm:$0xff]  ;;  %v2833_v15 = vpack.c.bf16 %v297_v10, %v277_v9  ;;  %v337_v20 = vld [vmem:[#allocation8 + $0x338] sm:$0xff] }
  0x8b   :  { %2806 = vmatprep.subr.bf16.mxu1 %v2805_v29  ;;  %v455_v46 = vld [vmem:[#allocation8 + $0x6e8] sm:$0xff]  ;;  %v454_v49 = vld [vmem:[#allocation8 + $0x6e0] sm:$0xff]  ;;  %v2837_v22 = vpack.c.bf16 %v337_v20, %v317_v19  ;;  %v316_v23 = vld [vmem:[#allocation8 + $0x290] sm:$0xff] }
  0x8c   :  { %v2817_v47 = vpack.c.bf16 %v455_v46, %v435_v45  ;;  %v2819_v50 = vpack.c.bf16 %v454_v49, %v434_v48  ;;  %v475_v51 = vld [vmem:[#allocation8 + $0x788] sm:$0xff]  ;;  %v474_v54 = vld [vmem:[#allocation8 + $0x780] sm:$0xff]  ;;  %v336_v24 = vld [vmem:[#allocation8 + $0x330] sm:$0xff] }
  0x8d   :  { %v495_v52 = vld [vmem:[#allocation8 + $0x828] sm:$0xff]  ;;  %v494_v55 = vld [vmem:[#allocation8 + $0x820] sm:$0xff]  ;;  %v357_v25 = vld [vmem:[#allocation8 + $0x3d8] sm:$0xff]  ;;  %v2839_v27 = vpack.c.bf16 %v336_v24, %v316_v23 }
  0x8e   :  { %2808 = vmatpush1.bf16.msra.mxu1 %v2807_v32  ;;  %v2821_v53 = vpack.c.bf16 %v495_v52, %v475_v51  ;;  %v2823_v56 = vpack.c.bf16 %v494_v55, %v474_v54  ;;  %v515_v57 = vld [vmem:[#allocation8 + $0x8c8] sm:$0xff]  ;;  %v514_v60 = vld [vmem:[#allocation8 + $0x8c0] sm:$0xff]  ;;  %v377_v26 = vld [vmem:[#allocation8 + $0x478] sm:$0xff] }
  0x8f   :  { %2810 = vmatprep.subr.bf16.mxu1 %v2809_v35  ;;  %v535_v58 = vld [vmem:[#allocation8 + $0x968] sm:$0xff]  ;;  %v534_v61 = vld [vmem:[#allocation8 + $0x960] sm:$0xff]  ;;  %v2841_v28 = vpack.c.bf16 %v377_v26, %v357_v25  ;;  %v356_v29 = vld [vmem:[#allocation8 + $0x3d0] sm:$0xff] }
  0x90   :  { %v2825_v59 = vpack.c.bf16 %v535_v58, %v515_v57  ;;  %v2827_v62 = vpack.c.bf16 %v534_v61, %v514_v60  ;;  %v376_v30 = vld [vmem:[#allocation8 + $0x470] sm:$0xff]  ;;  %v397_v31 = vld [vmem:[#allocation8 + $0x518] sm:$0xff]  ;;  %v259_v57 = vld [vmem:[#allocation8 + $0xc8] sm:$0xff] }
  0x91   :  { %v417_v32 = vld [vmem:[#allocation8 + $0x5b8] sm:$0xff]  ;;  %v2843_v33 = vpack.c.bf16 %v376_v30, %v356_v29  ;;  %v396_v35 = vld [vmem:[#allocation8 + $0x510] sm:$0xff]  ;;  %v238_v63 = vld [vmem:[#allocation8 + $0x20] sm:$0xff] }
  0x92   :  { %2812 = vmatpush1.bf16.msra.mxu1 %v2811_v38  ;;  %v2845_v34 = vpack.c.bf16 %v417_v32, %v397_v31  ;;  %v416_v36 = vld [vmem:[#allocation8 + $0x5b0] sm:$0xff]  ;;  %v437_v37 = vld [vmem:[#allocation8 + $0x658] sm:$0xff]  ;;  %v258_v0 = vld [vmem:[#allocation8 + $0xc0] sm:$0xff] }
  0x93   :  { %2814 = vmatprep.subr.bf16.mxu1 %v2813_v41  ;;  %v457_v38 = vld [vmem:[#allocation8 + $0x6f8] sm:$0xff]  ;;  %v2847_v39 = vpack.c.bf16 %v416_v36, %v396_v35  ;;  %v436_v41 = vld [vmem:[#allocation8 + $0x650] sm:$0xff]  ;;  %v2863_v9 = vpack.c.bf16 %v258_v0, %v238_v63  ;;  %v319_v20 = vld [vmem:[#allocation8 + $0x2a8] sm:$0xff] }
  0x94   :  { %v2849_v40 = vpack.c.bf16 %v457_v38, %v437_v37  ;;  %v456_v42 = vld [vmem:[#allocation8 + $0x6f0] sm:$0xff]  ;;  %v477_v43 = vld [vmem:[#allocation8 + $0x798] sm:$0xff]  ;;  %v318_v26 = vld [vmem:[#allocation8 + $0x2a0] sm:$0xff] }
  0x95   :  { %v2851_v45 = vpack.c.bf16 %v456_v42, %v436_v41  ;;  %v496_v48 = vld [vmem:[#allocation8 + $0x830] sm:$0xff]  ;;  %v517_v49 = vld [vmem:[#allocation8 + $0x8d8] sm:$0xff]  ;;  %v359_v32 = vld [vmem:[#allocation8 + $0x3e8] sm:$0xff] }
  0x96   :  { %2816 = vmatpush1.bf16.msra.mxu1 %v2815_v44  ;;  %v497_v44 = vld [vmem:[#allocation8 + $0x838] sm:$0xff]  ;;  %v536_v54 = vld [vmem:[#allocation8 + $0x970] sm:$0xff]  ;;  %v358_v38 = vld [vmem:[#allocation8 + $0x3e0] sm:$0xff] }
  0x97   :  { %2818 = vmatprep.subr.bf16.mxu1 %v2817_v47  ;;  %v2853_v46 = vpack.c.bf16 %v497_v44, %v477_v43  ;;  %v476_v47 = vld [vmem:[#allocation8 + $0x790] sm:$0xff]  ;;  %v241_v58 = vld [vmem:[#allocation8 + $0x38] sm:$0xff]  ;;  %v399_v44 = vld [vmem:[#allocation8 + $0x528] sm:$0xff] }
  0x98   :  { %v2855_v51 = vpack.c.bf16 %v496_v48, %v476_v47  ;;  %v261_v60 = vld [vmem:[#allocation8 + $0xd8] sm:$0xff]  ;;  %v300_v19 = vld [vmem:[#allocation8 + $0x210] sm:$0xff]  ;;  %v458_v63 = vld [vmem:[#allocation8 + $0x700] sm:$0xff] }
  0x99   :  { %v2893_v61 = vpack.c.bf16 %v261_v60, %v241_v58  ;;  %v281_v6 = vld [vmem:[#allocation8 + $0x178] sm:$0xff]  ;;  %v320_v30 = vld [vmem:[#allocation8 + $0x2b0] sm:$0xff] }
  0x9a   :  { %2820 = vmatpush1.bf16.msra.mxu1 %v2819_v50  ;;  %v537_v50 = vld [vmem:[#allocation8 + $0x978] sm:$0xff]  ;;  %v340_v31 = vld [vmem:[#allocation8 + $0x350] sm:$0xff] }
  0x9b   :  { %2822 = vmatprep.subr.bf16.mxu1 %v2821_v53  ;;  %v2857_v52 = vpack.c.bf16 %v537_v50, %v517_v49  ;;  %v516_v53 = vld [vmem:[#allocation8 + $0x8d0] sm:$0xff]  ;;  %v301_v7 = vld [vmem:[#allocation8 + $0x218] sm:$0xff]  ;;  %v2903_v37 = vpack.c.bf16 %v340_v31, %v320_v30  ;;  %v398_v50 = vld [vmem:[#allocation8 + $0x520] sm:$0xff] }
  0x9c   :  { %v2859_v55 = vpack.c.bf16 %v536_v54, %v516_v53  ;;  %v2897_v17 = vpack.c.bf16 %v301_v7, %v281_v6  ;;  %v341_v23 = vld [vmem:[#allocation8 + $0x358] sm:$0xff]  ;;  %v360_v42 = vld [vmem:[#allocation8 + $0x3f0] sm:$0xff]  ;;  %v499_v6 = vld [vmem:[#allocation8 + $0x848] sm:$0xff] }
  0x9d   :  { %v381_v35 = vld [vmem:[#allocation8 + $0x498] sm:$0xff]  ;;  %v380_v43 = vld [vmem:[#allocation8 + $0x490] sm:$0xff]  ;;  %v243_v31 = vld [vmem:[#allocation8 + $0x48] sm:$0xff] }
  0x9e   :  { %2824 = vmatpush1.bf16.msra.mxu1 %v2823_v56  ;;  %v239_v56 = vld [vmem:[#allocation8 + $0x28] sm:$0xff]  ;;  %v421_v47 = vld [vmem:[#allocation8 + $0x5d8] sm:$0xff]  ;;  %v2907_v49 = vpack.c.bf16 %v380_v43, %v360_v42  ;;  %v400_v54 = vld [vmem:[#allocation8 + $0x530] sm:$0xff] }
  0x9f   :  { %2826 = vmatprep.subr.bf16.mxu1 %v2825_v59  ;;  %v2861_v59 = vpack.c.bf16 %v259_v57, %v239_v56  ;;  %v439_v56 = vld [vmem:[#allocation8 + $0x668] sm:$0xff]  ;;  %v441_v58 = vld [vmem:[#allocation8 + $0x678] sm:$0xff]  ;;  %v540_v30 = vld [vmem:[#allocation8 + $0x990] sm:$0xff] }
  0xa0   :  { %v459_v57 = vld [vmem:[#allocation8 + $0x708] sm:$0xff]  ;;  %v481_v7 = vld [vmem:[#allocation8 + $0x7b8] sm:$0xff]  ;;  %v264_v42 = vld [vmem:[#allocation8 + $0xf0] sm:$0xff] }
  0xa1   :  { %v2881_v0 = vpack.c.bf16 %v459_v57, %v439_v56  ;;  %v283_v43 = vld [vmem:[#allocation8 + $0x188] sm:$0xff]  ;;  %v325_v57 = vld [vmem:[#allocation8 + $0x2d8] sm:$0xff] }
  0xa2   :  { %2828 = vmatpush1.bf16.msra.mxu1 %v2827_v62  ;;  %v2436_v62 = vld [vmem:[#allocation7] ss:$0 sm:$0xff]  ;;  %v343_v56 = vld [vmem:[#allocation8 + $0x368] sm:$0xff] }
  0xa3   :  { %2862 = vmatprep.subr.bf16.mxu1 %v2861_v59  ;;  %v461_v59 = vld [vmem:[#allocation8 + $0x718] sm:$0xff] }
 0x112   :  { %v127_v2 = vpop.xlane.xlu0 %126 }
 0x113   :  { %v134_v4 = vmul.f32 0.00390625, %v127_v2  ;;  %v240_v2 = vld [vmem:[#allocation8 + $0x30] sm:$0xff] }
 0x115   :  { %v151_v12 = vrot.slane %v134_v4, %v150_v3  ;;  %v279_v4 = vld [vmem:[#allocation8 + $0x168] sm:$0xff] }
 0x116   :  { %v132_v5 = vpop.xlane.xlu0 %131 }
 0x117   :  { %v135_v8 = vmul.f32 0.00390625, %v132_v5  ;;  %v299_v5 = vld [vmem:[#allocation8 + $0x208] sm:$0xff] }
 0x118   :  { %v2865_v16 = vpack.c.bf16 %v299_v5, %v279_v4  ;;  %v460_v4 = vld [vmem:[#allocation8 + $0x710] sm:$0xff]  ;;  %v479_v5 = vld [vmem:[#allocation8 + $0x7a8] sm:$0xff] }
 0x119   :  { %v155_v13 = vrot.slane %v135_v8, %v150_v3  ;;  %v260_v3 = vld [vmem:[#allocation8 + $0xd0] sm:$0xff] }
 0x11a   :  { %v2895_v10 = vpack.c.bf16 %v260_v3, %v240_v2  ;;  %v2913_v2 = vpack.c.bf16 %v461_v59, %v441_v58  ;;  %v440_v3 = vld [vmem:[#allocation8 + $0x670] sm:$0xff]  ;;  %v345_v58 = vld [vmem:[#allocation8 + $0x378] sm:$0xff] }
 0x11b   :  { %v157_v18 = vsel %vm156_vm2, %v155_v13, %v151_v12  ;;  %v278_v12 = vld [vmem:[#allocation8 + $0x160] sm:$0xff] }
 0x11c   :  { %2795 = vmatmul.mubr.msk.f32.vlgmr.msra.gmra.mrb[0].mxu0 %vm158_vm3, %v157_v18  ;;  %v298_v13 = vld [vmem:[#allocation8 + $0x200] sm:$0xff]  ;;  %v280_v18 = vld [vmem:[#allocation8 + $0x170] sm:$0xff] }
 0x11d   :  { %2832 = vmatpush1.bf16.msra.mxu0 %v2831_v14  ;;  %795 = vmatprep.mubr.f32.mxu0 %v3650_v11  ;;  %v2867_v24 = vpack.c.bf16 %v298_v13, %v278_v12  ;;  %v2899_v25 = vpack.c.bf16 %v300_v19, %v280_v18  ;;  %v478_v12 = vld [vmem:[#allocation8 + $0x7a0] sm:$0xff]  ;;  %v500_v18 = vld [vmem:[#allocation8 + $0x850] sm:$0xff]  ;;  %v519_v19 = vld [vmem:[#allocation8 + $0x8e8] sm:$0xff] }
 0x11e   :  { %2834 = vmatprep.subr.bf16.mxu0 %v2833_v15  ;;  %v498_v13 = vld [vmem:[#allocation8 + $0x840] sm:$0xff] }
 0x121   :  { %2836 = vmatpush1.bf16.msra.mxu0 %v2835_v21  ;;  %v339_v21 = vld [vmem:[#allocation8 + $0x348] sm:$0xff] }
 0x122   :  { %2838 = vmatprep.subr.bf16.mxu0 %v2837_v22  ;;  %v321_v22 = vld [vmem:[#allocation8 + $0x2b8] sm:$0xff] }
 0x123   :  { %v2901_v29 = vpack.c.bf16 %v341_v23, %v321_v22  ;;  %v541_v22 = vld [vmem:[#allocation8 + $0x998] sm:$0xff]  ;;  %v2887_v23 = vpack.c.bf16 %v498_v13, %v478_v12  ;;  %v382_v12 = vld [vmem:[#allocation8 + $0x4a0] sm:$0xff] }
 0x125   :  { %2840 = vmatpush1.bf16.msra.mxu0 %v2839_v27  ;;  %v338_v27 = vld [vmem:[#allocation8 + $0x340] sm:$0xff] }
 0x126   :  { %2842 = vmatprep.subr.bf16.mxu0 %v2841_v28  ;;  %v2869_v28 = vpack.c.bf16 %v339_v21, %v319_v20  ;;  %v2871_v36 = vpack.c.bf16 %v338_v27, %v318_v26  ;;  %v539_v20 = vld [vmem:[#allocation8 + $0x988] sm:$0xff]  ;;  %v521_v21 = vld [vmem:[#allocation8 + $0x8f8] sm:$0xff]  ;;  %v538_v26 = vld [vmem:[#allocation8 + $0x980] sm:$0xff] }
 0x127   :  { %v2889_v27 = vpack.c.bf16 %v539_v20, %v519_v19  ;;  %v423_v19 = vld [vmem:[#allocation8 + $0x5e8] sm:$0xff]  ;;  %v405_v20 = vld [vmem:[#allocation8 + $0x558] sm:$0xff] }
 0x129   :  { %2844 = vmatpush1.bf16.msra.mxu0 %v2843_v33  ;;  %v379_v33 = vld [vmem:[#allocation8 + $0x488] sm:$0xff] }
 0x12a   :  { %2846 = vmatprep.subr.bf16.mxu0 %v2845_v34  ;;  %v361_v34 = vld [vmem:[#allocation8 + $0x3f8] sm:$0xff] }
 0x12b   :  { %v2905_v41 = vpack.c.bf16 %v381_v35, %v361_v34  ;;  %v265_v34 = vld [vmem:[#allocation8 + $0xf8] sm:$0xff] }
 0x12d   :  { %2848 = vmatpush1.bf16.msra.mxu0 %v2847_v39  ;;  %v378_v39 = vld [vmem:[#allocation8 + $0x480] sm:$0xff] }
 0x12e   :  { %2850 = vmatprep.subr.bf16.mxu0 %v2849_v40  ;;  %v2873_v40 = vpack.c.bf16 %v379_v33, %v359_v32  ;;  %v2875_v48 = vpack.c.bf16 %v378_v39, %v358_v38  ;;  %v263_v32 = vld [vmem:[#allocation8 + $0xe8] sm:$0xff]  ;;  %v245_v33 = vld [vmem:[#allocation8 + $0x58] sm:$0xff]  ;;  %v262_v38 = vld [vmem:[#allocation8 + $0xe0] sm:$0xff] }
 0x12f   :  { %v2925_v39 = vpack.c.bf16 %v263_v32, %v243_v31  ;;  %v463_v31 = vld [vmem:[#allocation8 + $0x728] sm:$0xff]  ;;  %v445_v32 = vld [vmem:[#allocation8 + $0x698] sm:$0xff] }
 0x131   :  { %2852 = vmatpush1.bf16.msra.mxu0 %v2851_v45  ;;  %v419_v45 = vld [vmem:[#allocation8 + $0x5c8] sm:$0xff] }
 0x132   :  { %2854 = vmatprep.subr.bf16.mxu0 %v2853_v46  ;;  %v401_v46 = vld [vmem:[#allocation8 + $0x538] sm:$0xff] }
 0x133   :  { %v2909_v53 = vpack.c.bf16 %v421_v47, %v401_v46  ;;  %v305_v46 = vld [vmem:[#allocation8 + $0x238] sm:$0xff] }
 0x135   :  { %2856 = vmatpush1.bf16.msra.mxu0 %v2855_v51  ;;  %v418_v51 = vld [vmem:[#allocation8 + $0x5c0] sm:$0xff] }
 0x136   :  { %2858 = vmatprep.subr.bf16.mxu0 %v2857_v52  ;;  %v2877_v52 = vpack.c.bf16 %v419_v45, %v399_v44  ;;  %v2879_v60 = vpack.c.bf16 %v418_v51, %v398_v50  ;;  %v303_v44 = vld [vmem:[#allocation8 + $0x228] sm:$0xff]  ;;  %v285_v45 = vld [vmem:[#allocation8 + $0x198] sm:$0xff]  ;;  %v302_v50 = vld [vmem:[#allocation8 + $0x220] sm:$0xff] }
 0x137   :  { %v2929_v51 = vpack.c.bf16 %v303_v44, %v283_v43  ;;  %v503_v43 = vld [vmem:[#allocation8 + $0x868] sm:$0xff]  ;;  %v485_v44 = vld [vmem:[#allocation8 + $0x7d8] sm:$0xff] }
 0x139   :  { %2860 = vmatpush1.bf16.msra.mxu0 %v2859_v55  ;;  %v420_v55 = vld [vmem:[#allocation8 + $0x5d0] sm:$0xff] }
 0x13a   :  { %2894 = vmatprep.subr.bf16.mxu0 %v2893_v61  ;;  %v2911_v61 = vpack.c.bf16 %v420_v55, %v400_v54  ;;  %v304_v54 = vld [vmem:[#allocation8 + $0x230] sm:$0xff]  ;;  %v323_v55 = vld [vmem:[#allocation8 + $0x2c8] sm:$0xff] }
 0x1ef   :  { %v230_v8 = vpop.f32.mrb[0].mxu0 }
 0x1f0   :  { %v3803_v14 = vadd.f32 %v2436_v62, %v230_v8  ;;  %v2796_v15 = vpop.f32.mrb[1].mxu0  ;;  %v438_v62 = vld [vmem:[#allocation8 + $0x660] sm:$0xff]  ;;  %v501_v8 = vld [vmem:[#allocation8 + $0x858] sm:$0xff] }
 0x1f1   :  { %v2885_v15 = vpack.c.bf16 %v499_v6, %v479_v5  ;;  %v383_v5 = vld [vmem:[#allocation8 + $0x4a8] sm:$0xff]  ;;  %v365_v6 = vld [vmem:[#allocation8 + $0x418] sm:$0xff] }
 0x1f2   :  { %725 = vmatmul.mubr.f32.vlgmr.msra.gmra.mrb[0].mxu1 %v3803_v14  ;;  %796 = vmatmul.mubr.f32.vlgmr.msra.gmra.mrb[2].mxu0 %v3803_v14 }
 0x1f3   :  { %2864 = vmatpush1.bf16.msra.mxu1 %v2863_v9  ;;  %2896 = vmatpush1.bf16.msra.mxu0 %v2895_v10  ;;  %v2883_v9 = vpack.c.bf16 %v458_v63, %v438_v62  ;;  %v2915_v10 = vpack.c.bf16 %v460_v4, %v440_v3  ;;  %v342_v62 = vld [vmem:[#allocation8 + $0x360] sm:$0xff]  ;;  %v2933_v63 = vpack.c.bf16 %v343_v56, %v323_v55  ;;  %v344_v3 = vld [vmem:[#allocation8 + $0x370] sm:$0xff]  ;;  %v363_v4 = vld [vmem:[#allocation8 + $0x408] sm:$0xff] }
 0x1f4   :  { %2866 = vmatprep.subr.bf16.mxu1 %v2865_v16  ;;  %2898 = vmatprep.subr.bf16.mxu0 %v2897_v17  ;;  %v2917_v16 = vpack.c.bf16 %v501_v8, %v481_v7  ;;  %v480_v17 = vld [vmem:[#allocation8 + $0x7b0] sm:$0xff]  ;;  %v385_v7 = vld [vmem:[#allocation8 + $0x4b8] sm:$0xff]  ;;  %v2937_v13 = vpack.c.bf16 %v383_v5, %v363_v4  ;;  %v543_v55 = vld [vmem:[#allocation8 + $0x9a8] sm:$0xff] }
 0x1f5   :  { %866 = vmatprep.mubr.f32.mxu1 %v3650_v11  ;;  %937 = vmatprep.mubr.f32.mxu0 %v3650_v11  ;;  %v525_v56 = vld [vmem:[#allocation8 + $0x918] sm:$0xff]  ;;  %v267_v4 = vld [vmem:[#allocation8 + $0x108] sm:$0xff] }
 0x1f6   :  { %v249_v5 = vld [vmem:[#allocation8 + $0x78] sm:$0xff] }
 0x1f7   :  { %2868 = vmatpush1.bf16.msra.mxu1 %v2867_v24  ;;  %2900 = vmatpush1.bf16.msra.mxu0 %v2899_v25  ;;  %v2919_v24 = vpack.c.bf16 %v500_v18, %v480_v17  ;;  %v518_v25 = vld [vmem:[#allocation8 + $0x8e0] sm:$0xff]  ;;  %v384_v17 = vld [vmem:[#allocation8 + $0x4b0] sm:$0xff]  ;;  %v403_v18 = vld [vmem:[#allocation8 + $0x548] sm:$0xff] }
 0x1f8   :  { %2870 = vmatprep.subr.bf16.mxu1 %v2869_v28  ;;  %2902 = vmatprep.subr.bf16.mxu0 %v2901_v29  ;;  %v2921_v28 = vpack.c.bf16 %v541_v22, %v521_v21  ;;  %v520_v29 = vld [vmem:[#allocation8 + $0x8f0] sm:$0xff]  ;;  %v2891_v35 = vpack.c.bf16 %v538_v26, %v518_v25  ;;  %v425_v21 = vld [vmem:[#allocation8 + $0x5f8] sm:$0xff]  ;;  %v422_v25 = vld [vmem:[#allocation8 + $0x5e0] sm:$0xff]  ;;  %v2941_v26 = vpack.c.bf16 %v423_v19, %v403_v18 }
 0x1f9   :  { %v307_v18 = vld [vmem:[#allocation8 + $0x248] sm:$0xff]  ;;  %v289_v19 = vld [vmem:[#allocation8 + $0x1b8] sm:$0xff] }
 0x1fb   :  { %2872 = vmatpush1.bf16.msra.mxu1 %v2871_v36  ;;  %2904 = vmatpush1.bf16.msra.mxu0 %v2903_v37  ;;  %v2923_v36 = vpack.c.bf16 %v540_v30, %v520_v29  ;;  %v242_v37 = vld [vmem:[#allocation8 + $0x40] sm:$0xff]  ;;  %v424_v29 = vld [vmem:[#allocation8 + $0x5f0] sm:$0xff]  ;;  %v443_v30 = vld [vmem:[#allocation8 + $0x688] sm:$0xff] }
 0x1fc   :  { %2874 = vmatprep.subr.bf16.mxu1 %v2873_v40  ;;  %2906 = vmatprep.subr.bf16.mxu0 %v2905_v41  ;;  %v2957_v40 = vpack.c.bf16 %v265_v34, %v245_v33  ;;  %v244_v41 = vld [vmem:[#allocation8 + $0x50] sm:$0xff]  ;;  %v2927_v47 = vpack.c.bf16 %v262_v38, %v242_v37  ;;  %v465_v33 = vld [vmem:[#allocation8 + $0x738] sm:$0xff]  ;;  %v462_v37 = vld [vmem:[#allocation8 + $0x720] sm:$0xff]  ;;  %v2945_v38 = vpack.c.bf16 %v463_v31, %v443_v30 }
 0x1fd   :  { %v347_v30 = vld [vmem:[#allocation8 + $0x388] sm:$0xff]  ;;  %v329_v31 = vld [vmem:[#allocation8 + $0x2f8] sm:$0xff] }
 0x1ff   :  { %2876 = vmatpush1.bf16.msra.mxu1 %v2875_v48  ;;  %2908 = vmatpush1.bf16.msra.mxu0 %v2907_v49  ;;  %v2959_v48 = vpack.c.bf16 %v264_v42, %v244_v41  ;;  %v282_v49 = vld [vmem:[#allocation8 + $0x180] sm:$0xff]  ;;  %v464_v41 = vld [vmem:[#allocation8 + $0x730] sm:$0xff]  ;;  %v483_v42 = vld [vmem:[#allocation8 + $0x7c8] sm:$0xff] }
 0x200   :  { %2878 = vmatprep.subr.bf16.mxu1 %v2877_v52  ;;  %2910 = vmatprep.subr.bf16.mxu0 %v2909_v53  ;;  %v2961_v52 = vpack.c.bf16 %v305_v46, %v285_v45  ;;  %v284_v53 = vld [vmem:[#allocation8 + $0x190] sm:$0xff]  ;;  %v2931_v59 = vpack.c.bf16 %v302_v50, %v282_v49  ;;  %v505_v45 = vld [vmem:[#allocation8 + $0x878] sm:$0xff]  ;;  %v502_v49 = vld [vmem:[#allocation8 + $0x860] sm:$0xff]  ;;  %v2949_v50 = vpack.c.bf16 %v503_v43, %v483_v42 }
 0x201   :  { %v387_v42 = vld [vmem:[#allocation8 + $0x4c8] sm:$0xff]  ;;  %v369_v43 = vld [vmem:[#allocation8 + $0x438] sm:$0xff] }
 0x203   :  { %2880 = vmatpush1.bf16.msra.mxu1 %v2879_v60  ;;  %2912 = vmatpush1.bf16.msra.mxu0 %v2911_v61  ;;  %v2963_v60 = vpack.c.bf16 %v304_v54, %v284_v53  ;;  %v322_v61 = vld [vmem:[#allocation8 + $0x2c0] sm:$0xff]  ;;  %v504_v53 = vld [vmem:[#allocation8 + $0x870] sm:$0xff]  ;;  %v523_v54 = vld [vmem:[#allocation8 + $0x908] sm:$0xff] }
 0x204   :  { %2882 = vmatprep.subr.bf16.mxu1 %v2881_v0  ;;  %2914 = vmatprep.subr.bf16.mxu0 %v2913_v2  ;;  %v2965_v0 = vpack.c.bf16 %v345_v58, %v325_v57  ;;  %v324_v2 = vld [vmem:[#allocation8 + $0x2d0] sm:$0xff]  ;;  %v2935_v8 = vpack.c.bf16 %v342_v62, %v322_v61  ;;  %v545_v57 = vld [vmem:[#allocation8 + $0x9b8] sm:$0xff]  ;;  %v542_v61 = vld [vmem:[#allocation8 + $0x9a0] sm:$0xff]  ;;  %v2953_v62 = vpack.c.bf16 %v543_v55, %v523_v54 }
 0x205   :  { %v427_v54 = vld [vmem:[#allocation8 + $0x608] sm:$0xff]  ;;  %v409_v55 = vld [vmem:[#allocation8 + $0x578] sm:$0xff] }
 0x207   :  { %2884 = vmatpush1.bf16.msra.mxu1 %v2883_v9  ;;  %2916 = vmatpush1.bf16.msra.mxu0 %v2915_v10  ;;  %v2967_v9 = vpack.c.bf16 %v344_v3, %v324_v2  ;;  %v362_v10 = vld [vmem:[#allocation8 + $0x400] sm:$0xff]  ;;  %v544_v2 = vld [vmem:[#allocation8 + $0x9b0] sm:$0xff]  ;;  %v247_v3 = vld [vmem:[#allocation8 + $0x68] sm:$0xff] }
 0x208   :  { %2886 = vmatprep.subr.bf16.mxu1 %v2885_v15  ;;  %2918 = vmatprep.subr.bf16.mxu0 %v2917_v16  ;;  %v2969_v15 = vpack.c.bf16 %v385_v7, %v365_v6  ;;  %v364_v16 = vld [vmem:[#allocation8 + $0x410] sm:$0xff]  ;;  %v2939_v22 = vpack.c.bf16 %v382_v12, %v362_v10  ;;  %v269_v6 = vld [vmem:[#allocation8 + $0x118] sm:$0xff]  ;;  %v266_v10 = vld [vmem:[#allocation8 + $0x100] sm:$0xff]  ;;  %v2989_v12 = vpack.c.bf16 %v267_v4, %v247_v3 }
 0x209   :  { %v467_v3 = vld [vmem:[#allocation8 + $0x748] sm:$0xff]  ;;  %v449_v4 = vld [vmem:[#allocation8 + $0x6b8] sm:$0xff] }
 0x20b   :  { %2888 = vmatpush1.bf16.msra.mxu1 %v2887_v23  ;;  %2920 = vmatpush1.bf16.msra.mxu0 %v2919_v24  ;;  %v2971_v23 = vpack.c.bf16 %v384_v17, %v364_v16  ;;  %v402_v24 = vld [vmem:[#allocation8 + $0x540] sm:$0xff]  ;;  %v268_v16 = vld [vmem:[#allocation8 + $0x110] sm:$0xff]  ;;  %v287_v17 = vld [vmem:[#allocation8 + $0x1a8] sm:$0xff] }
 0x20c   :  { %2890 = vmatprep.subr.bf16.mxu1 %v2889_v27  ;;  %2922 = vmatprep.subr.bf16.mxu0 %v2921_v28  ;;  %v2973_v27 = vpack.c.bf16 %v425_v21, %v405_v20  ;;  %v404_v28 = vld [vmem:[#allocation8 + $0x550] sm:$0xff]  ;;  %v2943_v34 = vpack.c.bf16 %v422_v25, %v402_v24  ;;  %v309_v20 = vld [vmem:[#allocation8 + $0x258] sm:$0xff]  ;;  %v306_v24 = vld [vmem:[#allocation8 + $0x240] sm:$0xff]  ;;  %v2993_v25 = vpack.c.bf16 %v307_v18, %v287_v17 }
 0x20d   :  { %v507_v17 = vld [vmem:[#allocation8 + $0x888] sm:$0xff]  ;;  %v489_v18 = vld [vmem:[#allocation8 + $0x7f8] sm:$0xff] }
 0x20f   :  { %2892 = vmatpush1.bf16.msra.mxu1 %v2891_v35  ;;  %2924 = vmatpush1.bf16.msra.mxu0 %v2923_v36  ;;  %v2975_v35 = vpack.c.bf16 %v424_v29, %v404_v28  ;;  %v442_v36 = vld [vmem:[#allocation8 + $0x680] sm:$0xff]  ;;  %v308_v28 = vld [vmem:[#allocation8 + $0x250] sm:$0xff]  ;;  %v327_v29 = vld [vmem:[#allocation8 + $0x2e8] sm:$0xff] }
 0x210   :  { %2926 = vmatprep.subr.bf16.mxu1 %v2925_v39  ;;  %2958 = vmatprep.subr.bf16.mxu0 %v2957_v40  ;;  %v2977_v39 = vpack.c.bf16 %v465_v33, %v445_v32  ;;  %v444_v40 = vld [vmem:[#allocation8 + $0x690] sm:$0xff]  ;;  %v2947_v46 = vpack.c.bf16 %v462_v37, %v442_v36  ;;  %v349_v32 = vld [vmem:[#allocation8 + $0x398] sm:$0xff]  ;;  %v346_v36 = vld [vmem:[#allocation8 + $0x380] sm:$0xff]  ;;  %v2997_v37 = vpack.c.bf16 %v347_v30, %v327_v29 }
 0x211   :  { %v547_v29 = vld [vmem:[#allocation8 + $0x9c8] sm:$0xff]  ;;  %v529_v30 = vld [vmem:[#allocation8 + $0x938] sm:$0xff] }
 0x212   :  { %867 = vmatmul.mubr.f32.vlgmr.msra.gmra.mrb[2].mxu1 %v3803_v14  ;;  %938 = vmatmul.mubr.f32.vlgmr.msra.gmra.mrb[4].mxu0 %v3803_v14 }
 0x213   :  { %2928 = vmatpush1.bf16.msra.mxu1 %v2927_v47  ;;  %2960 = vmatpush1.bf16.msra.mxu0 %v2959_v48  ;;  %v2979_v47 = vpack.c.bf16 %v464_v41, %v444_v40  ;;  %v482_v48 = vld [vmem:[#allocation8 + $0x7c0] sm:$0xff]  ;;  %v348_v40 = vld [vmem:[#allocation8 + $0x390] sm:$0xff]  ;;  %v367_v41 = vld [vmem:[#allocation8 + $0x428] sm:$0xff] }
 0x214   :  { %2930 = vmatprep.subr.bf16.mxu1 %v2929_v51  ;;  %2962 = vmatprep.subr.bf16.mxu0 %v2961_v52  ;;  %v2981_v51 = vpack.c.bf16 %v505_v45, %v485_v44  ;;  %v484_v52 = vld [vmem:[#allocation8 + $0x7d0] sm:$0xff]  ;;  %v2951_v58 = vpack.c.bf16 %v502_v49, %v482_v48  ;;  %v389_v44 = vld [vmem:[#allocation8 + $0x4d8] sm:$0xff]  ;;  %v386_v48 = vld [vmem:[#allocation8 + $0x4c0] sm:$0xff]  ;;  %v3001_v49 = vpack.c.bf16 %v387_v42, %v367_v41 }
 0x215   :  { %1008 = vmatprep.mubr.f32.mxu1 %v3650_v11  ;;  %1079 = vmatprep.mubr.f32.mxu0 %v3650_v11  ;;  %v271_v41 = vld [vmem:[#allocation8 + $0x128] sm:$0xff]  ;;  %v253_v42 = vld [vmem:[#allocation8 + $0x98] sm:$0xff] }
 0x217   :  { %2932 = vmatpush1.bf16.msra.mxu1 %v2931_v59  ;;  %2964 = vmatpush1.bf16.msra.mxu0 %v2963_v60  ;;  %v2983_v59 = vpack.c.bf16 %v504_v53, %v484_v52  ;;  %v522_v60 = vld [vmem:[#allocation8 + $0x900] sm:$0xff]  ;;  %v388_v52 = vld [vmem:[#allocation8 + $0x4d0] sm:$0xff]  ;;  %v407_v53 = vld [vmem:[#allocation8 + $0x568] sm:$0xff] }
 0x218   :  { %2934 = vmatprep.subr.bf16.mxu1 %v2933_v63  ;;  %2966 = vmatprep.subr.bf16.mxu0 %v2965_v0  ;;  %v2985_v63 = vpack.c.bf16 %v545_v57, %v525_v56  ;;  %v524_v0 = vld [vmem:[#allocation8 + $0x910] sm:$0xff]  ;;  %v2955_v7 = vpack.c.bf16 %v542_v61, %v522_v60  ;;  %v429_v56 = vld [vmem:[#allocation8 + $0x618] sm:$0xff]  ;;  %v426_v60 = vld [vmem:[#allocation8 + $0x600] sm:$0xff]  ;;  %v3005_v61 = vpack.c.bf16 %v427_v54, %v407_v53 }
 0x219   :  { %v311_v53 = vld [vmem:[#allocation8 + $0x268] sm:$0xff]  ;;  %v293_v54 = vld [vmem:[#allocation8 + $0x1d8] sm:$0xff] }
 0x21b   :  { %2936 = vmatpush1.bf16.msra.mxu1 %v2935_v8  ;;  %2968 = vmatpush1.bf16.msra.mxu0 %v2967_v9  ;;  %v2987_v8 = vpack.c.bf16 %v544_v2, %v524_v0  ;;  %v246_v9 = vld [vmem:[#allocation8 + $0x60] sm:$0xff]  ;;  %v428_v0 = vld [vmem:[#allocation8 + $0x610] sm:$0xff]  ;;  %v447_v2 = vld [vmem:[#allocation8 + $0x6a8] sm:$0xff] }
 0x21c   :  { %2938 = vmatprep.subr.bf16.mxu1 %v2937_v13  ;;  %2970 = vmatprep.subr.bf16.mxu0 %v2969_v15  ;;  %v3021_v13 = vpack.c.bf16 %v269_v6, %v249_v5  ;;  %v248_v15 = vld [vmem:[#allocation8 + $0x70] sm:$0xff]  ;;  %v2991_v21 = vpack.c.bf16 %v266_v10, %v246_v9  ;;  %v469_v5 = vld [vmem:[#allocation8 + $0x758] sm:$0xff]  ;;  %v466_v9 = vld [vmem:[#allocation8 + $0x740] sm:$0xff]  ;;  %v3009_v10 = vpack.c.bf16 %v467_v3, %v447_v2 }
 0x21d   :  { %v351_v2 = vld [vmem:[#allocation8 + $0x3a8] sm:$0xff]  ;;  %v333_v3 = vld [vmem:[#allocation8 + $0x318] sm:$0xff] }
 0x21f   :  { %2940 = vmatpush1.bf16.msra.mxu1 %v2939_v22  ;;  %2972 = vmatpush1.bf16.msra.mxu0 %v2971_v23  ;;  %v3023_v22 = vpack.c.bf16 %v268_v16, %v248_v15  ;;  %v286_v23 = vld [vmem:[#allocation8 + $0x1a0] sm:$0xff]  ;;  %v468_v15 = vld [vmem:[#allocation8 + $0x750] sm:$0xff]  ;;  %v487_v16 = vld [vmem:[#allocation8 + $0x7e8] sm:$0xff] }
 0x220   :  { %2942 = vmatprep.subr.bf16.mxu1 %v2941_v26  ;;  %2974 = vmatprep.subr.bf16.mxu0 %v2973_v27  ;;  %v3025_v26 = vpack.c.bf16 %v309_v20, %v289_v19  ;;  %v288_v27 = vld [vmem:[#allocation8 + $0x1b0] sm:$0xff]  ;;  %v2995_v33 = vpack.c.bf16 %v306_v24, %v286_v23  ;;  %v509_v19 = vld [vmem:[#allocation8 + $0x898] sm:$0xff]  ;;  %v506_v23 = vld [vmem:[#allocation8 + $0x880] sm:$0xff]  ;;  %v3013_v24 = vpack.c.bf16 %v507_v17, %v487_v16 }
 0x221   :  { %v391_v16 = vld [vmem:[#allocation8 + $0x4e8] sm:$0xff]  ;;  %v373_v17 = vld [vmem:[#allocation8 + $0x458] sm:$0xff] }
 0x223   :  { %2944 = vmatpush1.bf16.msra.mxu1 %v2943_v34  ;;  %2976 = vmatpush1.bf16.msra.mxu0 %v2975_v35  ;;  %v3027_v34 = vpack.c.bf16 %v308_v28, %v288_v27  ;;  %v326_v35 = vld [vmem:[#allocation8 + $0x2e0] sm:$0xff]  ;;  %v508_v27 = vld [vmem:[#allocation8 + $0x890] sm:$0xff]  ;;  %v527_v28 = vld [vmem:[#allocation8 + $0x928] sm:$0xff] }
 0x224   :  { %2946 = vmatprep.subr.bf16.mxu1 %v2945_v38  ;;  %2978 = vmatprep.subr.bf16.mxu0 %v2977_v39  ;;  %v3029_v38 = vpack.c.bf16 %v349_v32, %v329_v31  ;;  %v328_v39 = vld [vmem:[#allocation8 + $0x2f0] sm:$0xff]  ;;  %v2999_v45 = vpack.c.bf16 %v346_v36, %v326_v35  ;;  %v549_v31 = vld [vmem:[#allocation8 + $0x9d8] sm:$0xff]  ;;  %v546_v35 = vld [vmem:[#allocation8 + $0x9c0] sm:$0xff]  ;;  %v3017_v36 = vpack.c.bf16 %v547_v29, %v527_v28 }
 0x225   :  { %v431_v28 = vld [vmem:[#allocation8 + $0x628] sm:$0xff]  ;;  %v413_v29 = vld [vmem:[#allocation8 + $0x598] sm:$0xff] }
 0x227   :  { %2948 = vmatpush1.bf16.msra.mxu1 %v2947_v46  ;;  %2980 = vmatpush1.bf16.msra.mxu0 %v2979_v47  ;;  %v3031_v46 = vpack.c.bf16 %v348_v40, %v328_v39  ;;  %v366_v47 = vld [vmem:[#allocation8 + $0x420] sm:$0xff]  ;;  %v548_v39 = vld [vmem:[#allocation8 + $0x9d0] sm:$0xff]  ;;  %v251_v40 = vld [vmem:[#allocation8 + $0x88] sm:$0xff] }
 0x228   :  { %2950 = vmatprep.subr.bf16.mxu1 %v2949_v50  ;;  %2982 = vmatprep.subr.bf16.mxu0 %v2981_v51  ;;  %v3033_v50 = vpack.c.bf16 %v389_v44, %v369_v43  ;;  %v368_v51 = vld [vmem:[#allocation8 + $0x430] sm:$0xff]  ;;  %v3003_v57 = vpack.c.bf16 %v386_v48, %v366_v47  ;;  %v273_v43 = vld [vmem:[#allocation8 + $0x138] sm:$0xff]  ;;  %v270_v47 = vld [vmem:[#allocation8 + $0x120] sm:$0xff]  ;;  %v3053_v48 = vpack.c.bf16 %v271_v41, %v251_v40 }
 0x229   :  { %v453_v40 = vld [vmem:[#allocation8 + $0x6d8] sm:$0xff] }
 0x22a   :  { %v473_v41 = vld [vmem:[#allocation8 + $0x778] sm:$0xff] }
 0x22b   :  { %2952 = vmatpush1.bf16.msra.mxu1 %v2951_v58  ;;  %2984 = vmatpush1.bf16.msra.mxu0 %v2983_v59  ;;  %v3035_v58 = vpack.c.bf16 %v388_v52, %v368_v51  ;;  %v406_v59 = vld [vmem:[#allocation8 + $0x560] sm:$0xff]  ;;  %v272_v51 = vld [vmem:[#allocation8 + $0x130] sm:$0xff]  ;;  %v291_v52 = vld [vmem:[#allocation8 + $0x1c8] sm:$0xff] }
 0x22c   :  { %2954 = vmatprep.subr.bf16.mxu1 %v2953_v62  ;;  %2986 = vmatprep.subr.bf16.mxu0 %v2985_v63  ;;  %v3037_v62 = vpack.c.bf16 %v429_v56, %v409_v55  ;;  %v408_v63 = vld [vmem:[#allocation8 + $0x570] sm:$0xff]  ;;  %v3007_v6 = vpack.c.bf16 %v426_v60, %v406_v59  ;;  %v313_v55 = vld [vmem:[#allocation8 + $0x278] sm:$0xff]  ;;  %v310_v59 = vld [vmem:[#allocation8 + $0x260] sm:$0xff]  ;;  %v3057_v60 = vpack.c.bf16 %v311_v53, %v291_v52 }
 0x22d   :  { %v493_v52 = vld [vmem:[#allocation8 + $0x818] sm:$0xff] }
 0x22e   :  { %v513_v53 = vld [vmem:[#allocation8 + $0x8b8] sm:$0xff] }
 0x22f   :  { %2956 = vmatpush1.bf16.msra.mxu1 %v2955_v7  ;;  %2988 = vmatpush1.bf16.msra.mxu0 %v2987_v8  ;;  %v3039_v7 = vpack.c.bf16 %v428_v0, %v408_v63  ;;  %v446_v8 = vld [vmem:[#allocation8 + $0x6a0] sm:$0xff]  ;;  %v312_v63 = vld [vmem:[#allocation8 + $0x270] sm:$0xff]  ;;  %v331_v0 = vld [vmem:[#allocation8 + $0x308] sm:$0xff] }
 0x230   :  { %2990 = vmatprep.subr.bf16.mxu1 %v2989_v12  ;;  %3022 = vmatprep.subr.bf16.mxu0 %v3021_v13  ;;  %v3041_v12 = vpack.c.bf16 %v469_v5, %v449_v4  ;;  %v448_v13 = vld [vmem:[#allocation8 + $0x6b0] sm:$0xff]  ;;  %v3011_v20 = vpack.c.bf16 %v466_v9, %v446_v8  ;;  %v353_v4 = vld [vmem:[#allocation8 + $0x3b8] sm:$0xff]  ;;  %v350_v8 = vld [vmem:[#allocation8 + $0x3a0] sm:$0xff]  ;;  %v3061_v9 = vpack.c.bf16 %v351_v2, %v331_v0 }
 0x231   :  { %v533_v0 = vld [vmem:[#allocation8 + $0x958] sm:$0xff] }
 0x232   :  { %1009 = vmatmul.mubr.f32.vlgmr.msra.gmra.mrb[4].mxu1 %v3803_v14  ;;  %1080 = vmatmul.mubr.f32.vlgmr.msra.gmra.mrb[6].mxu0 %v3803_v14  ;;  %v553_v2 = vld [vmem:[#allocation8 + $0x9f8] sm:$0xff] }
 0x233   :  { %2992 = vmatpush1.bf16.msra.mxu1 %v2991_v21  ;;  %3024 = vmatpush1.bf16.msra.mxu0 %v3023_v22  ;;  %v3043_v21 = vpack.c.bf16 %v468_v15, %v448_v13  ;;  %v486_v22 = vld [vmem:[#allocation8 + $0x7e0] sm:$0xff]  ;;  %v352_v13 = vld [vmem:[#allocation8 + $0x3b0] sm:$0xff]  ;;  %v371_v15 = vld [vmem:[#allocation8 + $0x448] sm:$0xff] }
 0x234   :  { %2994 = vmatprep.subr.bf16.mxu1 %v2993_v25  ;;  %3026 = vmatprep.subr.bf16.mxu0 %v3025_v26  ;;  %v3045_v25 = vpack.c.bf16 %v509_v19, %v489_v18  ;;  %v488_v26 = vld [vmem:[#allocation8 + $0x7f0] sm:$0xff]  ;;  %v3015_v32 = vpack.c.bf16 %v506_v23, %v486_v22  ;;  %v393_v18 = vld [vmem:[#allocation8 + $0x4f8] sm:$0xff]  ;;  %v390_v22 = vld [vmem:[#allocation8 + $0x4e0] sm:$0xff]  ;;  %v3065_v23 = vpack.c.bf16 %v391_v16, %v371_v15 }
 0x235   :  { %1150 = vmatprep.mubr.f32.mxu1 %v3650_v11  ;;  %1221 = vmatprep.mubr.f32.mxu0 %v3650_v11  ;;  %v1438_v15 = vld [vmem:[#allocation11 + $0x180] sm:$0xff]  ;;  %v1439_v16 = vld [vmem:[#allocation11 + $0x188] sm:$0xff] }
 0x237   :  { %2996 = vmatpush1.bf16.msra.mxu1 %v2995_v33  ;;  %3028 = vmatpush1.bf16.msra.mxu0 %v3027_v34  ;;  %v3047_v33 = vpack.c.bf16 %v508_v27, %v488_v26  ;;  %v526_v34 = vld [vmem:[#allocation8 + $0x920] sm:$0xff]  ;;  %v392_v26 = vld [vmem:[#allocation8 + $0x4f0] sm:$0xff]  ;;  %v411_v27 = vld [vmem:[#allocation8 + $0x588] sm:$0xff] }
 0x238   :  { %2998 = vmatprep.subr.bf16.mxu1 %v2997_v37  ;;  %3030 = vmatprep.subr.bf16.mxu0 %v3029_v38  ;;  %v3049_v37 = vpack.c.bf16 %v549_v31, %v529_v30  ;;  %v528_v38 = vld [vmem:[#allocation8 + $0x930] sm:$0xff]  ;;  %v3019_v44 = vpack.c.bf16 %v546_v35, %v526_v34  ;;  %v433_v30 = vld [vmem:[#allocation8 + $0x638] sm:$0xff]  ;;  %v3069_v34 = vpack.c.bf16 %v431_v28, %v411_v27  ;;  %v1440_v27 = vld [vmem:[#allocation11 + $0x190] sm:$0xff] }
 0x239   :  { %v3101_v35 = vpack.c.bf16 %v433_v30, %v413_v29  ;;  %v1441_v28 = vld [vmem:[#allocation11 + $0x198] sm:$0xff] }
 0x23b   :  { %3000 = vmatpush1.bf16.msra.mxu1 %v2999_v45  ;;  %3032 = vmatpush1.bf16.msra.mxu0 %v3031_v46  ;;  %v3051_v45 = vpack.c.bf16 %v548_v39, %v528_v38  ;;  %v250_v46 = vld [vmem:[#allocation8 + $0x80] sm:$0xff]  ;;  %v451_v38 = vld [vmem:[#allocation8 + $0x6c8] sm:$0xff] }
 0x23c   :  { %3002 = vmatprep.subr.bf16.mxu1 %v3001_v49  ;;  %3034 = vmatprep.subr.bf16.mxu0 %v3033_v50  ;;  %v3085_v49 = vpack.c.bf16 %v273_v43, %v253_v42  ;;  %v252_v50 = vld [vmem:[#allocation8 + $0x90] sm:$0xff]  ;;  %v3055_v56 = vpack.c.bf16 %v270_v47, %v250_v46  ;;  %v471_v39 = vld [vmem:[#allocation8 + $0x768] sm:$0xff]  ;;  %v3105_v47 = vpack.c.bf16 %v473_v41, %v453_v40 }
 0x23d   :  { %v3073_v46 = vpack.c.bf16 %v471_v39, %v451_v38  ;;  %v1442_v38 = vld [vmem:[#allocation11 + $0x1a0] sm:$0xff]  ;;  %v1443_v39 = vld [vmem:[#allocation11 + $0x1a8] sm:$0xff] }
 0x23f   :  { %3004 = vmatpush1.bf16.msra.mxu1 %v3003_v57  ;;  %3036 = vmatpush1.bf16.msra.mxu0 %v3035_v58  ;;  %v3087_v57 = vpack.c.bf16 %v272_v51, %v252_v50  ;;  %v290_v58 = vld [vmem:[#allocation8 + $0x1c0] sm:$0xff]  ;;  %v491_v50 = vld [vmem:[#allocation8 + $0x808] sm:$0xff] }
 0x240   :  { %3006 = vmatprep.subr.bf16.mxu1 %v3005_v61  ;;  %3038 = vmatprep.subr.bf16.mxu0 %v3037_v62  ;;  %v3089_v61 = vpack.c.bf16 %v313_v55, %v293_v54  ;;  %v292_v62 = vld [vmem:[#allocation8 + $0x1d0] sm:$0xff]  ;;  %v3059_v5 = vpack.c.bf16 %v310_v59, %v290_v58  ;;  %v511_v51 = vld [vmem:[#allocation8 + $0x8a8] sm:$0xff]  ;;  %v3109_v59 = vpack.c.bf16 %v513_v53, %v493_v52 }
 0x241   :  { %v3077_v58 = vpack.c.bf16 %v511_v51, %v491_v50  ;;  %v1444_v50 = vld [vmem:[#allocation11 + $0x1b0] sm:$0xff]  ;;  %v1445_v51 = vld [vmem:[#allocation11 + $0x1b8] sm:$0xff] }
 0x242   :  { %v1396_v53 = vld [vmem:[#allocation11 + $0x30] sm:$0xff] }
 0x243   :  { %3008 = vmatpush1.bf16.msra.mxu1 %v3007_v6  ;;  %3040 = vmatpush1.bf16.msra.mxu0 %v3039_v7  ;;  %v3091_v6 = vpack.c.bf16 %v312_v63, %v292_v62  ;;  %v330_v7 = vld [vmem:[#allocation8 + $0x300] sm:$0xff]  ;;  %v531_v62 = vld [vmem:[#allocation8 + $0x948] sm:$0xff] }
 0x244   :  { %3010 = vmatprep.subr.bf16.mxu1 %v3009_v10  ;;  %3042 = vmatprep.subr.bf16.mxu0 %v3041_v12  ;;  %v3093_v10 = vpack.c.bf16 %v353_v4, %v333_v3  ;;  %v332_v12 = vld [vmem:[#allocation8 + $0x310] sm:$0xff]  ;;  %v3063_v19 = vpack.c.bf16 %v350_v8, %v330_v7  ;;  %v551_v63 = vld [vmem:[#allocation8 + $0x9e8] sm:$0xff]  ;;  %v3113_v8 = vpack.c.bf16 %v553_v2, %v533_v0 }
 0x245   :  { %v3081_v7 = vpack.c.bf16 %v551_v63, %v531_v62  ;;  %v1447_v62 = vld [vmem:[#allocation11 + $0x1c8] sm:$0xff]  ;;  %v1398_v2 = vld [vmem:[#allocation11 + $0x40] sm:$0xff] }
 0x247   :  { %3012 = vmatpush1.bf16.msra.mxu1 %v3011_v20  ;;  %3044 = vmatpush1.bf16.msra.mxu0 %v3043_v21  ;;  %v3095_v20 = vpack.c.bf16 %v352_v13, %v332_v12  ;;  %v370_v21 = vld [vmem:[#allocation8 + $0x440] sm:$0xff]  ;;  %v1406_v12 = vld [vmem:[#allocation11 + $0x80] sm:$0xff] }
 0x248   :  { %3014 = vmatprep.subr.bf16.mxu1 %v3013_v24  ;;  %3046 = vmatprep.subr.bf16.mxu0 %v3045_v25  ;;  %v3097_v24 = vpack.c.bf16 %v393_v18, %v373_v17  ;;  %v372_v25 = vld [vmem:[#allocation8 + $0x450] sm:$0xff]  ;;  %v3067_v31 = vpack.c.bf16 %v390_v22, %v370_v21  ;;  %v1407_v13 = vld [vmem:[#allocation11 + $0x88] sm:$0xff]  ;;  %v3149_v22 = vpack.c.bf16 %v1439_v16, %v1438_v15  ;;  %v1400_v16 = vld [vmem:[#allocation11 + $0x50] sm:$0xff] }
 0x249   :  { %v3117_v21 = vpack.c.bf16 %v1407_v13, %v1406_v12  ;;  %v1449_v12 = vld [vmem:[#allocation11 + $0x1d8] sm:$0xff] }
 0x24b   :  { %3016 = vmatpush1.bf16.msra.mxu1 %v3015_v32  ;;  %3048 = vmatpush1.bf16.msra.mxu0 %v3047_v33  ;;  %v410_v32 = vld [vmem:[#allocation8 + $0x580] sm:$0xff] }
 0x24c   :  { %3018 = vmatprep.subr.bf16.mxu1 %v3017_v36  ;;  %3050 = vmatprep.subr.bf16.mxu0 %v3049_v37  ;;  %v430_v33 = vld [vmem:[#allocation8 + $0x620] sm:$0xff]  ;;  %v412_v36 = vld [vmem:[#allocation8 + $0x590] sm:$0xff] }
 0x24d   :  { %v432_v37 = vld [vmem:[#allocation8 + $0x630] sm:$0xff]  ;;  %v3071_v42 = vpack.c.bf16 %v430_v33, %v410_v32  ;;  %v3153_v33 = vpack.c.bf16 %v1441_v28, %v1440_v27 }
 0x24e   :  { %v3103_v43 = vpack.c.bf16 %v432_v37, %v412_v36  ;;  %v1410_v36 = vld [vmem:[#allocation11 + $0xa0] sm:$0xff]  ;;  %v1411_v37 = vld [vmem:[#allocation11 + $0xa8] sm:$0xff] }
 0x24f   :  { %3020 = vmatpush1.bf16.msra.mxu1 %v3019_v44  ;;  %3052 = vmatpush1.bf16.msra.mxu0 %v3051_v45  ;;  %v450_v44 = vld [vmem:[#allocation8 + $0x6c0] sm:$0xff]  ;;  %v1402_v28 = vld [vmem:[#allocation11 + $0x60] sm:$0xff] }
 0x250   :  { %3054 = vmatprep.subr.bf16.mxu1 %v3053_v48  ;;  %3086 = vmatprep.subr.bf16.mxu0 %v3085_v49  ;;  %v470_v45 = vld [vmem:[#allocation8 + $0x760] sm:$0xff]  ;;  %v452_v48 = vld [vmem:[#allocation8 + $0x6d0] sm:$0xff] }
 0x251   :  { %v472_v49 = vld [vmem:[#allocation8 + $0x770] sm:$0xff]  ;;  %v3075_v54 = vpack.c.bf16 %v470_v45, %v450_v44  ;;  %v3125_v44 = vpack.c.bf16 %v1411_v37, %v1410_v36  ;;  %v3157_v45 = vpack.c.bf16 %v1443_v39, %v1442_v38  ;;  %v1404_v39 = vld [vmem:[#allocation11 + $0x70] sm:$0xff] }
 0x252   :  { %1151 = vmatmul.mubr.f32.vlgmr.msra.gmra.mrb[6].mxu1 %v3803_v14  ;;  %1222 = vmatmul.mubr.f32.vlgmr.msra.gmra.mrb[8].mxu0 %v3803_v14  ;;  %v3107_v55 = vpack.c.bf16 %v472_v49, %v452_v48  ;;  %v1412_v48 = vld [vmem:[#allocation11 + $0xb0] sm:$0xff]  ;;  %v1413_v49 = vld [vmem:[#allocation11 + $0xb8] sm:$0xff] }
 0x253   :  { %3056 = vmatpush1.bf16.msra.mxu1 %v3055_v56  ;;  %3088 = vmatpush1.bf16.msra.mxu0 %v3087_v57  ;;  %v490_v56 = vld [vmem:[#allocation8 + $0x800] sm:$0xff]  ;;  %v1453_v36 = vld [vmem:[#allocation11 + $0x1f8] sm:$0xff] }
 0x254   :  { %3058 = vmatprep.subr.bf16.mxu1 %v3057_v60  ;;  %3090 = vmatprep.subr.bf16.mxu0 %v3089_v61  ;;  %v510_v57 = vld [vmem:[#allocation8 + $0x8a0] sm:$0xff]  ;;  %v492_v60 = vld [vmem:[#allocation8 + $0x810] sm:$0xff] }
 0x255   :  { %1292 = vmatprep.mubr.f32.mxu1 %v3650_v11  ;;  %1363 = vmatprep.mubr.f32.mxu0 %v3650_v11  ;;  %v3099_v11 = vpack.c.bf16 %v392_v26, %v372_v25  ;;  %v512_v61 = vld [vmem:[#allocation8 + $0x8b0] sm:$0xff]  ;;  %v3079_v3 = vpack.c.bf16 %v510_v57, %v490_v56  ;;  %v1408_v25 = vld [vmem:[#allocation11 + $0x90] sm:$0xff]  ;;  %v3161_v56 = vpack.c.bf16 %v1445_v51, %v1444_v50 }
 0x256   :  { %v3111_v4 = vpack.c.bf16 %v512_v61, %v492_v60  ;;  %v1409_v26 = vld [vmem:[#allocation11 + $0x98] sm:$0xff]  ;;  %v1428_v57 = vld [vmem:[#allocation11 + $0x130] sm:$0xff]  ;;  %v1415_v60 = vld [vmem:[#allocation11 + $0xc8] sm:$0xff] }
 0x257   :  { %3060 = vmatpush1.bf16.msra.mxu1 %v3059_v5  ;;  %3092 = vmatpush1.bf16.msra.mxu0 %v3091_v6  ;;  %v530_v5 = vld [vmem:[#allocation8 + $0x940] sm:$0xff]  ;;  %v3121_v32 = vpack.c.bf16 %v1409_v26, %v1408_v25  ;;  %v1446_v61 = vld [vmem:[#allocation11 + $0x1c0] sm:$0xff] }
 0x258   :  { %3062 = vmatprep.subr.bf16.mxu1 %v3061_v9  ;;  %3094 = vmatprep.subr.bf16.mxu0 %v3093_v10  ;;  %v550_v6 = vld [vmem:[#allocation8 + $0x9e0] sm:$0xff]  ;;  %v532_v9 = vld [vmem:[#allocation8 + $0x950] sm:$0xff] }
 0x259   :  { %v552_v10 = vld [vmem:[#allocation8 + $0x9f0] sm:$0xff]  ;;  %v3083_v17 = vpack.c.bf16 %v550_v6, %v530_v5  ;;  %v3165_v5 = vpack.c.bf16 %v1447_v62, %v1446_v61  ;;  %v1451_v25 = vld [vmem:[#allocation11 + $0x1e8] sm:$0xff] }
 0x25a   :  { %v3115_v18 = vpack.c.bf16 %v552_v10, %v532_v9  ;;  %v1430_v6 = vld [vmem:[#allocation11 + $0x140] sm:$0xff]  ;;  %v1417_v9 = vld [vmem:[#allocation11 + $0xd8] sm:$0xff]  ;;  %v1448_v10 = vld [vmem:[#allocation11 + $0x1d0] sm:$0xff] }
 0x25b   :  { %3064 = vmatpush1.bf16.msra.mxu1 %v3063_v19  ;;  %3096 = vmatpush1.bf16.msra.mxu0 %v3095_v20  ;;  %v1390_v19 = vld [vmem:[#allocation11] sm:$0xff]  ;;  %v1391_v20 = vld [vmem:[#allocation11 + $0x8] sm:$0xff] }
 0x25c   :  { %3066 = vmatprep.subr.bf16.mxu1 %v3065_v23  ;;  %3098 = vmatprep.subr.bf16.mxu0 %v3097_v24  ;;  %v1422_v23 = vld [vmem:[#allocation11 + $0x100] sm:$0xff]  ;;  %v1423_v24 = vld [vmem:[#allocation11 + $0x108] sm:$0xff]  ;;  %v3119_v29 = vpack.c.bf16 %v1391_v20, %v1390_v19  ;;  %v3169_v19 = vpack.c.bf16 %v1449_v12, %v1448_v10  ;;  %v1432_v20 = vld [vmem:[#allocation11 + $0x150] sm:$0xff] }
 0x25d   :  { %v3151_v30 = vpack.c.bf16 %v1423_v24, %v1422_v23  ;;  %v1419_v23 = vld [vmem:[#allocation11 + $0xe8] sm:$0xff]  ;;  %v1450_v24 = vld [vmem:[#allocation11 + $0x1e0] sm:$0xff]  ;;  %v1473_v12 = vld [vmem:[#allocation11 + $0x298] sm:$0xff] }
 0x25f   :  { %3068 = vmatpush1.bf16.msra.mxu1 %v3067_v31  ;;  %3100 = vmatpush1.bf16.msra.mxu0 %v3099_v11  ;;  %v1392_v31 = vld [vmem:[#allocation11 + $0x10] sm:$0xff]  ;;  %v1393_v11 = vld [vmem:[#allocation11 + $0x18] sm:$0xff] }
 0x260   :  { %3070 = vmatprep.subr.bf16.mxu1 %v3069_v34  ;;  %3102 = vmatprep.subr.bf16.mxu0 %v3101_v35  ;;  %v1424_v34 = vld [vmem:[#allocation11 + $0x110] sm:$0xff]  ;;  %v1425_v35 = vld [vmem:[#allocation11 + $0x118] sm:$0xff]  ;;  %v3123_v40 = vpack.c.bf16 %v1393_v11, %v1392_v31  ;;  %v3173_v31 = vpack.c.bf16 %v1451_v25, %v1450_v24  ;;  %v1434_v11 = vld [vmem:[#allocation11 + $0x160] sm:$0xff] }
 0x261   :  { %v3155_v41 = vpack.c.bf16 %v1425_v35, %v1424_v34  ;;  %v1421_v34 = vld [vmem:[#allocation11 + $0xf8] sm:$0xff]  ;;  %v1452_v35 = vld [vmem:[#allocation11 + $0x1f0] sm:$0xff] }
 0x263   :  { %3072 = vmatpush1.bf16.msra.mxu1 %v3071_v42  ;;  %3104 = vmatpush1.bf16.msra.mxu0 %v3103_v43  ;;  %v1394_v42 = vld [vmem:[#allocation11 + $0x20] sm:$0xff]  ;;  %v1395_v43 = vld [vmem:[#allocation11 + $0x28] sm:$0xff] }
 0x264   :  { %3074 = vmatprep.subr.bf16.mxu1 %v3073_v46  ;;  %3106 = vmatprep.subr.bf16.mxu0 %v3105_v47  ;;  %v1426_v46 = vld [vmem:[#allocation11 + $0x120] sm:$0xff]  ;;  %v1427_v47 = vld [vmem:[#allocation11 + $0x128] sm:$0xff]  ;;  %v3127_v52 = vpack.c.bf16 %v1395_v43, %v1394_v42  ;;  %v3177_v42 = vpack.c.bf16 %v1453_v36, %v1452_v35  ;;  %v1436_v43 = vld [vmem:[#allocation11 + $0x170] sm:$0xff] }
 0x267   :  { %3076 = vmatpush1.bf16.msra.mxu1 %v3075_v54  ;;  %3108 = vmatpush1.bf16.msra.mxu0 %v3107_v55  ;;  %v1397_v54 = vld [vmem:[#allocation11 + $0x38] sm:$0xff]  ;;  %v3129_v55 = vpack.c.bf16 %v1413_v49, %v1412_v48  ;;  %v1503_v48 = vld [vmem:[#allocation11 + $0x388] sm:$0xff] }
 0x268   :  { %3078 = vmatprep.subr.bf16.mxu1 %v3077_v58  ;;  %3110 = vmatprep.subr.bf16.mxu0 %v3109_v59  ;;  %v1429_v58 = vld [vmem:[#allocation11 + $0x138] sm:$0xff]  ;;  %v1414_v59 = vld [vmem:[#allocation11 + $0xc0] sm:$0xff]  ;;  %v3131_v63 = vpack.c.bf16 %v1397_v54, %v1396_v53  ;;  %v3827_v53 = vsub.s32 2, %v3799_v1  ;;  %v3829_v54 = vld [vmem:[#allocation10] sm:$0xff] }
 0x269   :  { %v3163_v0 = vpack.c.bf16 %v1429_v58, %v1428_v57 }
 0x26a   :  { %v571_v58 = vrot.slane %v3829_v54, %v3827_v53 }
 0x26b   :  { %3080 = vmatpush1.bf16.msra.mxu1 %v3079_v3  ;;  %3112 = vmatpush1.bf16.msra.mxu0 %v3111_v4  ;;  %v1399_v3 = vld [vmem:[#allocation11 + $0x48] sm:$0xff]  ;;  %v3133_v4 = vpack.c.bf16 %v1415_v60, %v1414_v59 }
 0x26c   :  { %3082 = vmatprep.subr.bf16.mxu1 %v3081_v7  ;;  %3114 = vmatprep.subr.bf16.mxu0 %v3113_v8  ;;  %v1431_v7 = vld [vmem:[#allocation11 + $0x148] sm:$0xff]  ;;  %v1416_v8 = vld [vmem:[#allocation11 + $0xd0] sm:$0xff]  ;;  %v3135_v13 = vpack.c.bf16 %v1399_v3, %v1398_v2 }
 0x26d   :  { %v3167_v15 = vpack.c.bf16 %v1431_v7, %v1430_v6  ;;  %v1486_v6 = vld [vmem:[#allocation11 + $0x300] sm:$0xff]  ;;  %v1487_v7 = vld [vmem:[#allocation11 + $0x308] sm:$0xff] }
 0x26f   :  { %3084 = vmatpush1.bf16.msra.mxu1 %v3083_v17  ;;  %3116 = vmatpush1.bf16.msra.mxu0 %v3115_v18  ;;  %v1401_v17 = vld [vmem:[#allocation11 + $0x58] sm:$0xff]  ;;  %v3137_v18 = vpack.c.bf16 %v1417_v9, %v1416_v8  ;;  %v1472_v8 = vld [vmem:[#allocation11 + $0x290] sm:$0xff] }
 0x270   :  { %3118 = vmatprep.subr.bf16.mxu1 %v3117_v21  ;;  %3150 = vmatprep.subr.bf16.mxu0 %v3149_v22  ;;  %v1433_v21 = vld [vmem:[#allocation11 + $0x158] sm:$0xff]  ;;  %v1418_v22 = vld [vmem:[#allocation11 + $0xe0] sm:$0xff]  ;;  %v3139_v26 = vpack.c.bf16 %v1401_v17, %v1400_v16  ;;  %v3185_v24 = vpack.c.bf16 %v1473_v12, %v1472_v8 }
 0x271   :  { %v3171_v27 = vpack.c.bf16 %v1433_v21, %v1432_v20  ;;  %v1456_v20 = vld [vmem:[#allocation11 + $0x210] sm:$0xff]  ;;  %v1457_v21 = vld [vmem:[#allocation11 + $0x218] sm:$0xff] }
 0x272   :  { %1293 = vmatmul.mubr.f32.vlgmr.msra.gmra.mrb[8].mxu1 %v3803_v14  ;;  %1364 = vmatmul.mubr.f32.vlgmr.msra.gmra.mrb[10].mxu0 %v3803_v14  ;;  %v3159_v14 = vpack.c.bf16 %v1427_v47, %v1426_v46  ;;  %v1471_v46 = vld [vmem:[#allocation11 + $0x288] sm:$0xff]  ;;  %v1502_v47 = vld [vmem:[#allocation11 + $0x380] sm:$0xff]  ;;  %v1465_v12 = vld [vmem:[#allocation11 + $0x258] sm:$0xff] }
 0x273   :  { %3120 = vmatpush3.bf16.msra.mxu1 %v3119_v29  ;;  %3152 = vmatpush3.bf16.msra.mxu0 %v3151_v30  ;;  %v1403_v29 = vld [vmem:[#allocation11 + $0x68] sm:$0xff]  ;;  %v3141_v30 = vpack.c.bf16 %v1419_v23, %v1418_v22 }
 0x274   :  { %3122 = vmatprep.subr.bf16.mxu1 %v3121_v32  ;;  %3154 = vmatprep.subr.bf16.mxu0 %v3153_v33  ;;  %v1435_v32 = vld [vmem:[#allocation11 + $0x168] sm:$0xff]  ;;  %v1420_v33 = vld [vmem:[#allocation11 + $0xf0] sm:$0xff]  ;;  %v3143_v37 = vpack.c.bf16 %v1403_v29, %v1402_v28  ;;  %v1474_v28 = vld [vmem:[#allocation11 + $0x2a0] sm:$0xff] }
 0x275   :  { %v3175_v38 = vpack.c.bf16 %v1435_v32, %v1434_v11  ;;  %v1475_v29 = vld [vmem:[#allocation11 + $0x2a8] sm:$0xff]  ;;  %v3187_v11 = vpack.c.bf16 %v1457_v21, %v1456_v20  ;;  %v1514_v20 = vld [vmem:[#allocation11 + $0x3e0] sm:$0xff] }
 0x276   :  { %v3189_v35 = vpack.c.bf16 %v1475_v29, %v1474_v28  ;;  %v1515_v21 = vld [vmem:[#allocation11 + $0x3e8] sm:$0xff]  ;;  %v586_v29 = vsub.s32 6, %v3799_v1 }
 0x277   :  { %3124 = vmatpush3.bf16.msra.mxu1 %v3123_v40  ;;  %3156 = vmatpush3.bf16.msra.mxu0 %v3155_v41  ;;  %v1405_v40 = vld [vmem:[#allocation11 + $0x78] sm:$0xff]  ;;  %v3145_v41 = vpack.c.bf16 %v1421_v34, %v1420_v33  ;;  %v1458_v33 = vld [vmem:[#allocation11 + $0x220] sm:$0xff]  ;;  %v1459_v34 = vld [vmem:[#allocation11 + $0x228] sm:$0xff]  ;;  %v3237_v28 = vpack.c.bf16 %v1515_v21, %v1514_v20 }
 0x278   :  { %3126 = vmatprep.subr.bf16.mxu1 %v3125_v44  ;;  %3158 = vmatprep.subr.bf16.mxu0 %v3157_v45  ;;  %v1437_v44 = vld [vmem:[#allocation11 + $0x178] sm:$0xff]  ;;  %v1470_v45 = vld [vmem:[#allocation11 + $0x280] sm:$0xff]  ;;  %v3147_v49 = vpack.c.bf16 %v1405_v40, %v1404_v39  ;;  %v1476_v39 = vld [vmem:[#allocation11 + $0x2b0] sm:$0xff] }
 0x279   :  { %v3179_v50 = vpack.c.bf16 %v1437_v44, %v1436_v43  ;;  %v3181_v51 = vpack.c.bf16 %v1471_v46, %v1470_v45  ;;  %v1477_v40 = vld [vmem:[#allocation11 + $0x2b8] sm:$0xff]  ;;  %v3191_v43 = vpack.c.bf16 %v1459_v34, %v1458_v33  ;;  %v1460_v45 = vld [vmem:[#allocation11 + $0x230] sm:$0xff]  ;;  %v590_v33 = vsub.s32 7, %v3799_v1 }
 0x27a   :  { %v1461_v46 = vld [vmem:[#allocation11 + $0x238] sm:$0xff] }
 0x27b   :  { %3128 = vmatpush3.bf16.msra.mxu1 %v3127_v52  ;;  %3160 = vmatpush3.bf16.msra.mxu0 %v3159_v14  ;;  %v3213_v52 = vpack.c.bf16 %v1503_v48, %v1502_v47  ;;  %v3824_v14 = vsub.s32 0, %v3799_v1  ;;  %v3193_v47 = vpack.c.bf16 %v1477_v40, %v1476_v39  ;;  %v1485_v34 = vld [vmem:[#allocation11 + $0x2f8] sm:$0xff]  ;;  %v1468_v40 = vld [vmem:[#allocation11 + $0x270] sm:$0xff] }
 0x27c   :  { %3130 = vmatprep.subr.bf16.mxu1 %v3129_v55  ;;  %3162 = vmatprep.subr.bf16.mxu0 %v3161_v56  ;;  %v3832_v55 = vsub.s32 1, %v3799_v1  ;;  %v3835_v56 = vsub.s32 3, %v3799_v1  ;;  %v1521_v20 = vld [vmem:[#allocation11 + $0x418] sm:$0xff] }
 0x27d   :  { %v563_v57 = vrot.slane %v3829_v54, %v3824_v14 }
 0x27e   :  { %v567_v59 = vrot.slane %v3829_v54, %v3832_v55  ;;  %v575_v60 = vrot.slane %v3829_v54, %v3835_v56 }
 0x27f   :  { %3132 = vmatpush3.bf16.msra.mxu1 %v3131_v63  ;;  %3164 = vmatpush3.bf16.msra.mxu0 %v3163_v0  ;;  %v1454_v63 = vld [vmem:[#allocation11 + $0x200] sm:$0xff]  ;;  %v1455_v0 = vld [vmem:[#allocation11 + $0x208] sm:$0xff] }
 0x280   :  { %3134 = vmatprep.subr.bf16.mxu1 %v3133_v4  ;;  %3166 = vmatprep.subr.bf16.mxu0 %v3165_v5 }
 0x283   :  { %3136 = vmatpush3.bf16.msra.mxu1 %v3135_v13  ;;  %3168 = vmatpush3.bf16.msra.mxu0 %v3167_v15  ;;  %v1504_v13 = vld [vmem:[#allocation11 + $0x390] sm:$0xff]  ;;  %v1505_v15 = vld [vmem:[#allocation11 + $0x398] sm:$0xff] }
 0x284   :  { %3138 = vmatprep.subr.bf16.mxu1 %v3137_v18  ;;  %3170 = vmatprep.subr.bf16.mxu0 %v3169_v19  ;;  %v3183_v18 = vpack.c.bf16 %v1455_v0, %v1454_v63  ;;  %v3215_v19 = vpack.c.bf16 %v1487_v7, %v1486_v6  ;;  %v3217_v25 = vpack.c.bf16 %v1505_v15, %v1504_v13  ;;  %v1512_v6 = vld [vmem:[#allocation11 + $0x3d0] sm:$0xff]  ;;  %v1513_v7 = vld [vmem:[#allocation11 + $0x3d8] sm:$0xff] }
 0x285   :  { %v3233_v15 = vpack.c.bf16 %v1513_v7, %v1512_v6  ;;  %v1550_v6 = vld [vmem:[#allocation11 + $0x500] sm:$0xff]  ;;  %v1536_v7 = vld [vmem:[#allocation11 + $0x490] sm:$0xff] }
 0x287   :  { %3140 = vmatpush3.bf16.msra.mxu1 %v3139_v26  ;;  %3172 = vmatpush3.bf16.msra.mxu0 %v3171_v27  ;;  %v1488_v26 = vld [vmem:[#allocation11 + $0x310] sm:$0xff]  ;;  %v1489_v27 = vld [vmem:[#allocation11 + $0x318] sm:$0xff] }
 0x288   :  { %3142 = vmatprep.subr.bf16.mxu1 %v3141_v30  ;;  %3174 = vmatprep.subr.bf16.mxu0 %v3173_v31  ;;  %v1506_v30 = vld [vmem:[#allocation11 + $0x3a0] sm:$0xff]  ;;  %v1507_v31 = vld [vmem:[#allocation11 + $0x3a8] sm:$0xff]  ;;  %v3219_v32 = vpack.c.bf16 %v1489_v27, %v1488_v26 }
 0x289   :  { %v3221_v36 = vpack.c.bf16 %v1507_v31, %v1506_v30  ;;  %v1467_v26 = vld [vmem:[#allocation11 + $0x268] sm:$0xff]  ;;  %v1498_v30 = vld [vmem:[#allocation11 + $0x360] sm:$0xff] }
 0x28a   :  { %v1499_v31 = vld [vmem:[#allocation11 + $0x368] sm:$0xff] }
 0x28b   :  { %3144 = vmatpush3.bf16.msra.mxu1 %v3143_v37  ;;  %3176 = vmatpush3.bf16.msra.mxu0 %v3175_v38  ;;  %v1490_v37 = vld [vmem:[#allocation11 + $0x320] sm:$0xff]  ;;  %v1491_v38 = vld [vmem:[#allocation11 + $0x328] sm:$0xff]  ;;  %v3239_v39 = vpack.c.bf16 %v1499_v31, %v1498_v30 }
 0x28c   :  { %3146 = vmatprep.subr.bf16.mxu1 %v3145_v41  ;;  %3178 = vmatprep.subr.bf16.mxu0 %v3177_v42  ;;  %v1508_v41 = vld [vmem:[#allocation11 + $0x3b0] sm:$0xff]  ;;  %v1509_v42 = vld [vmem:[#allocation11 + $0x3b8] sm:$0xff]  ;;  %v3223_v44 = vpack.c.bf16 %v1491_v38, %v1490_v37  ;;  %v1539_v30 = vld [vmem:[#allocation11 + $0x4a8] sm:$0xff] }
 0x28d   :  { %v3225_v48 = vpack.c.bf16 %v1509_v42, %v1508_v41  ;;  %v1469_v41 = vld [vmem:[#allocation11 + $0x278] sm:$0xff]  ;;  %v1500_v42 = vld [vmem:[#allocation11 + $0x370] sm:$0xff]  ;;  %v1570_v31 = vld [vmem:[#allocation11 + $0x5a0] sm:$0xff] }
 0x28f   :  { %3148 = vmatpush3.bf16.msra.mxu1 %v3147_v49  ;;  %3180 = vmatpush3.bf16.msra.mxu0 %v3179_v50  ;;  %v1492_v49 = vld [vmem:[#allocation11 + $0x330] sm:$0xff]  ;;  %v1493_v50 = vld [vmem:[#allocation11 + $0x338] sm:$0xff] }
 0x290   :  { %3182 = vmatprep.subr.bf16.mxu1 %v3181_v51  ;;  %3214 = vmatprep.subr.bf16.mxu0 %v3213_v52  ;;  %v1478_v51 = vld [vmem:[#allocation11 + $0x2c0] sm:$0xff]  ;;  %v1479_v52 = vld [vmem:[#allocation11 + $0x2c8] sm:$0xff] }
 0x291   :  { %v3197_v63 = vpack.c.bf16 %v1479_v52, %v1478_v51  ;;  %v1566_v51 = vld [vmem:[#allocation11 + $0x580] sm:$0xff]  ;;  %v1567_v52 = vld [vmem:[#allocation11 + $0x588] sm:$0xff] }
 0x2c5   :  { %v726_v61 = vpop.f32.mrb[0].mxu1  ;;  %v797_v62 = vpop.f32.mrb[2].mxu0 }
 0x2c6   :  { %v727_v2 = vadd.f32 %v726_v61, %v563_v57  ;;  %v798_v3 = vadd.f32 %v797_v62, %v571_v58  ;;  %v728_v4 = vpop.f32.mrb[1].mxu1  ;;  %v799_v5 = vpop.f32.mrb[3].mxu0  ;;  %v1510_v57 = vld [vmem:[#allocation11 + $0x3c0] sm:$0xff]  ;;  %v1511_v58 = vld [vmem:[#allocation11 + $0x3c8] sm:$0xff] }
 0x2c7   :  { %v729_v9 = vadd.f32 %v728_v4, %v567_v59  ;;  %v800_v10 = vadd.f32 %v799_v5, %v575_v60  ;;  %v3195_v59 = vpack.c.bf16 %v1461_v46, %v1460_v45  ;;  %v3227_v60 = vpack.c.bf16 %v1493_v50, %v1492_v49  ;;  %v1462_v61 = vld [vmem:[#allocation11 + $0x240] sm:$0xff]  ;;  %v1463_v62 = vld [vmem:[#allocation11 + $0x248] sm:$0xff]  ;;  %v1480_v4 = vld [vmem:[#allocation11 + $0x2d0] sm:$0xff] }
 0x2c8   :  { %v1370_v22 = vmax.f32 %v727_v2, 0.0  ;;  %v1372_v23 = vmax.f32 %v798_v3, 0.0  ;;  %v3229_v0 = vpack.c.bf16 %v1511_v58, %v1510_v57  ;;  %v1494_v2 = vld [vmem:[#allocation11 + $0x340] sm:$0xff]  ;;  %v1495_v3 = vld [vmem:[#allocation11 + $0x348] sm:$0xff]  ;;  %v1481_v5 = vld [vmem:[#allocation11 + $0x2d8] sm:$0xff]  ;;  %v3199_v8 = vpack.c.bf16 %v1463_v62, %v1462_v61 }
 0x2c9   :  { %v1371_v16 = vmax.f32 %v729_v9, 0.0  ;;  %v1373_v17 = vmax.f32 %v800_v10, 0.0  ;;  %v3231_v9 = vpack.c.bf16 %v1495_v3, %v1494_v2  ;;  %v1464_v10 = vld [vmem:[#allocation11 + $0x250] sm:$0xff]  ;;  %v3201_v13 = vpack.c.bf16 %v1481_v5, %v1480_v4  ;;  %v1501_v46 = vld [vmem:[#allocation11 + $0x378] sm:$0xff]  ;;  %v1518_v62 = vld [vmem:[#allocation11 + $0x400] sm:$0xff] }
 0x2ca   :  { %v591_v50 = vrot.slane %v3829_v54, %v590_v33  ;;  %v3277_v5 = vpack.c.bf16 %v1567_v52, %v1566_v51  ;;  %v1556_v52 = vld [vmem:[#allocation11 + $0x530] sm:$0xff] }
 0x2cb   :  { %1781 = vmatprep.mubr.f32.mxu1 %v1371_v16  ;;  %1851 = vmatprep.mubr.f32.mxu0 %v1373_v17  ;;  %v1496_v16 = vld [vmem:[#allocation11 + $0x350] sm:$0xff]  ;;  %v1497_v17 = vld [vmem:[#allocation11 + $0x358] sm:$0xff] }
 0x2cc   :  { %1782 = vmatmul.mubr.f32.vlgmr.msra.gmra.mrb[10].mxu1 %v1370_v22  ;;  %1852 = vmatmul.mubr.f32.vlgmr.msra.gmra.mrb[12].mxu0 %v1372_v23  ;;  %v3203_v22 = vpack.c.bf16 %v1465_v12, %v1464_v10  ;;  %v3235_v23 = vpack.c.bf16 %v1497_v17, %v1496_v16  ;;  %v1537_v10 = vld [vmem:[#allocation11 + $0x498] sm:$0xff]  ;;  %v1568_v12 = vld [vmem:[#allocation11 + $0x590] sm:$0xff] }
 0x2cd   :  { %3184 = vmatpush3.bf16.msra.mxu1 %v3183_v18  ;;  %3216 = vmatpush3.bf16.msra.mxu0 %v3215_v19  ;;  %v1482_v18 = vld [vmem:[#allocation11 + $0x2e0] sm:$0xff]  ;;  %v1483_v19 = vld [vmem:[#allocation11 + $0x2e8] sm:$0xff] }
 0x2ce   :  { %3186 = vmatprep.subr.bf16.mxu1 %v3185_v24  ;;  %3218 = vmatprep.subr.bf16.mxu0 %v3217_v25  ;;  %v578_v24 = vsub.s32 4, %v3799_v1  ;;  %v1466_v25 = vld [vmem:[#allocation11 + $0x260] sm:$0xff]  ;;  %v3205_v27 = vpack.c.bf16 %v1483_v19, %v1482_v18  ;;  %v1520_v19 = vld [vmem:[#allocation11 + $0x410] sm:$0xff] }
 0x2cf   :  { %v3207_v38 = vpack.c.bf16 %v1467_v26, %v1466_v25  ;;  %v1552_v26 = vld [vmem:[#allocation11 + $0x510] sm:$0xff] }
 0x2d0   :  { %v579_v37 = vrot.slane %v3829_v54, %v578_v24 }
 0x2d1   :  { %3188 = vmatpush3.bf16.msra.mxu1 %v3187_v11  ;;  %3220 = vmatpush3.bf16.msra.mxu0 %v3219_v32  ;;  %v1484_v11 = vld [vmem:[#allocation11 + $0x2f0] sm:$0xff]  ;;  %v582_v32 = vsub.s32 5, %v3799_v1 }
 0x2d2   :  { %3190 = vmatprep.subr.bf16.mxu1 %v3189_v35  ;;  %3222 = vmatprep.subr.bf16.mxu0 %v3221_v36  ;;  %v1516_v35 = vld [vmem:[#allocation11 + $0x3f0] sm:$0xff]  ;;  %v1517_v36 = vld [vmem:[#allocation11 + $0x3f8] sm:$0xff] }
 0x2d3   :  { %v3241_v45 = vpack.c.bf16 %v1517_v36, %v1516_v35  ;;  %v583_v49 = vrot.slane %v3829_v54, %v582_v32  ;;  %v1522_v36 = vld [vmem:[#allocation11 + $0x420] sm:$0xff] }
 0x2d5   :  { %3192 = vmatpush3.bf16.msra.mxu1 %v3191_v43  ;;  %3224 = vmatpush3.bf16.msra.mxu0 %v3223_v44  ;;  %v587_v43 = vrot.slane %v3829_v54, %v586_v29  ;;  %v3209_v44 = vpack.c.bf16 %v1485_v34, %v1484_v11  ;;  %v1551_v54 = vld [vmem:[#allocation11 + $0x508] sm:$0xff]  ;;  %v3251_v34 = vpack.c.bf16 %v1521_v20, %v1520_v19  ;;  %v1561_v19 = vld [vmem:[#allocation11 + $0x558] sm:$0xff]  ;;  %v1546_v20 = vld [vmem:[#allocation11 + $0x4e0] sm:$0xff] }
 0x2d6   :  { %3194 = vmatprep.subr.bf16.mxu1 %v3193_v47  ;;  %3226 = vmatprep.subr.bf16.mxu0 %v3225_v48  ;;  %v1534_v47 = vld [vmem:[#allocation11 + $0x480] sm:$0xff]  ;;  %v1535_v48 = vld [vmem:[#allocation11 + $0x488] sm:$0xff]  ;;  %v3279_v18 = vpack.c.bf16 %v1551_v54, %v1550_v6  ;;  %v1544_v54 = vld [vmem:[#allocation11 + $0x4d0] sm:$0xff] }
 0x2d7   :  { %v3245_v61 = vpack.c.bf16 %v1535_v48, %v1534_v47  ;;  %v1571_v11 = vld [vmem:[#allocation11 + $0x5a8] sm:$0xff]  ;;  %v1524_v48 = vld [vmem:[#allocation11 + $0x430] sm:$0xff] }
 0x2d8   :  { %v1559_v6 = vld [vmem:[#allocation11 + $0x548] sm:$0xff] }
 0x2d9   :  { %3196 = vmatpush3.bf16.msra.mxu1 %v3195_v59  ;;  %3228 = vmatpush3.bf16.msra.mxu0 %v3227_v60  ;;  %v3211_v59 = vpack.c.bf16 %v1469_v41, %v1468_v40  ;;  %v3243_v60 = vpack.c.bf16 %v1501_v46, %v1500_v42  ;;  %v1554_v40 = vld [vmem:[#allocation11 + $0x520] sm:$0xff]  ;;  %v1555_v41 = vld [vmem:[#allocation11 + $0x528] sm:$0xff]  ;;  %v1540_v42 = vld [vmem:[#allocation11 + $0x4b0] sm:$0xff] }
 0x2da   :  { %3198 = vmatprep.subr.bf16.mxu1 %v3197_v63  ;;  %3230 = vmatprep.subr.bf16.mxu0 %v3229_v0  ;;  %v1519_v63 = vld [vmem:[#allocation11 + $0x408] sm:$0xff]  ;;  %v3287_v47 = vpack.c.bf16 %v1555_v41, %v1554_v40 }
 0x2db   :  { %v3247_v17 = vpack.c.bf16 %v1519_v63, %v1518_v62 }
 0x2dd   :  { %3200 = vmatpush3.bf16.msra.mxu1 %v3199_v8  ;;  %3232 = vmatpush3.bf16.msra.mxu0 %v3231_v9 }
 0x2de   :  { %3202 = vmatprep.subr.bf16.mxu1 %v3201_v13  ;;  %3234 = vmatprep.subr.bf16.mxu0 %v3233_v15  ;;  %v1569_v13 = vld [vmem:[#allocation11 + $0x598] sm:$0xff] }
 0x2df   :  { %v3281_v25 = vpack.c.bf16 %v1569_v13, %v1568_v12  ;;  %v1528_v13 = vld [vmem:[#allocation11 + $0x450] sm:$0xff] }
 0x2e1   :  { %3204 = vmatpush3.bf16.msra.mxu1 %v3203_v22  ;;  %3236 = vmatpush3.bf16.msra.mxu0 %v3235_v23  ;;  %v3249_v23 = vpack.c.bf16 %v1537_v10, %v1536_v7  ;;  %v1545_v7 = vld [vmem:[#allocation11 + $0x4d8] sm:$0xff] }
 0x2e2   :  { %3206 = vmatprep.subr.bf16.mxu1 %v3205_v27  ;;  %3238 = vmatprep.subr.bf16.mxu0 %v3237_v28  ;;  %v1553_v27 = vld [vmem:[#allocation11 + $0x518] sm:$0xff]  ;;  %v1538_v28 = vld [vmem:[#allocation11 + $0x4a0] sm:$0xff] }
 0x2e3   :  { %v3283_v35 = vpack.c.bf16 %v1553_v27, %v1552_v26  ;;  %v3861_v27 = vld [vmem:[#allocation10 + $0x8] sm:$0xff] }
 0x2e4   :  { %v595_v40 = vrot.slane %v3861_v27, %v3824_v14 }
 0x2e5   :  { %v868_v57 = vpop.f32.mrb[2].mxu1  ;;  %v939_v58 = vpop.f32.mrb[4].mxu0  ;;  %3208 = vmatpush3.bf16.msra.mxu1 %v3207_v38  ;;  %3240 = vmatpush3.bf16.msra.mxu0 %v3239_v39  ;;  %v3253_v38 = vpack.c.bf16 %v1539_v30, %v1538_v28  ;;  %v3285_v39 = vpack.c.bf16 %v1571_v11, %v1570_v31  ;;  %v1530_v28 = vld [vmem:[#allocation11 + $0x460] sm:$0xff]  ;;  %v1531_v30 = vld [vmem:[#allocation11 + $0x468] sm:$0xff] }
 0x2e6   :  { %v869_v0 = vadd.f32 %v868_v57, %v579_v37  ;;  %v940_v2 = vadd.f32 %v939_v58, %v587_v43  ;;  %v870_v3 = vpop.f32.mrb[3].mxu1  ;;  %v941_v4 = vpop.f32.mrb[5].mxu0  ;;  %3210 = vmatprep.subr.bf16.mxu1 %v3209_v44  ;;  %3242 = vmatprep.subr.bf16.mxu0 %v3241_v45  ;;  %v1523_v37 = vld [vmem:[#allocation11 + $0x428] sm:$0xff]  ;;  %v1541_v43 = vld [vmem:[#allocation11 + $0x4b8] sm:$0xff]  ;;  %v1572_v44 = vld [vmem:[#allocation11 + $0x5b0] sm:$0xff]  ;;  %v3271_v41 = vpack.c.bf16 %v1531_v30, %v1530_v28 }
 0x2e7   :  { %v871_v8 = vadd.f32 %v870_v3, %v583_v49  ;;  %v942_v9 = vadd.f32 %v941_v4, %v591_v50  ;;  %v1573_v45 = vld [vmem:[#allocation11 + $0x5b8] sm:$0xff]  ;;  %v3255_v46 = vpack.c.bf16 %v1523_v37, %v1522_v36  ;;  %v3257_v50 = vpack.c.bf16 %v1541_v43, %v1540_v42  ;;  %v1542_v58 = vld [vmem:[#allocation11 + $0x4c0] sm:$0xff]  ;;  %v1548_v36 = vld [vmem:[#allocation11 + $0x4f0] sm:$0xff] }
 0x2e8   :  { %v1374_v21 = vmax.f32 %v869_v0, 0.0  ;;  %v1376_v22 = vmax.f32 %v940_v2, 0.0  ;;  %v1525_v49 = vld [vmem:[#allocation11 + $0x438] sm:$0xff]  ;;  %v3289_v51 = vpack.c.bf16 %v1573_v45, %v1572_v44  ;;  %v1526_v0 = vld [vmem:[#allocation11 + $0x440] sm:$0xff]  ;;  %v1527_v2 = vld [vmem:[#allocation11 + $0x448] sm:$0xff] }
 0x2e9   :  { %v1375_v15 = vmax.f32 %v871_v8, 0.0  ;;  %v1377_v16 = vmax.f32 %v942_v9, 0.0  ;;  %3212 = vmatpush3.bf16.msra.mxu1 %v3211_v59  ;;  %3244 = vmatpush3.bf16.msra.mxu0 %v3243_v60  ;;  %v1557_v57 = vld [vmem:[#allocation11 + $0x538] sm:$0xff]  ;;  %v1543_v59 = vld [vmem:[#allocation11 + $0x4c8] sm:$0xff]  ;;  %v1574_v60 = vld [vmem:[#allocation11 + $0x5c0] sm:$0xff]  ;;  %v3259_v62 = vpack.c.bf16 %v1525_v49, %v1524_v48  ;;  %v3263_v10 = vpack.c.bf16 %v1527_v2, %v1526_v0 }
 0x2ea   :  { %3246 = vmatprep.subr.bf16.mxu1 %v3245_v61  ;;  %3278 = vmatprep.subr.bf16.mxu0 %v3277_v5  ;;  %v1575_v61 = vld [vmem:[#allocation11 + $0x5c8] sm:$0xff]  ;;  %v3291_v63 = vpack.c.bf16 %v1557_v57, %v1556_v52  ;;  %v3261_v3 = vpack.c.bf16 %v1543_v59, %v1542_v58  ;;  %v1558_v5 = vld [vmem:[#allocation11 + $0x540] sm:$0xff]  ;;  %v1576_v8 = vld [vmem:[#allocation11 + $0x5d0] sm:$0xff]  ;;  %v599_v52 = vrot.slane %v3861_v27, %v3832_v55 }
 0x2eb   :  { %1921 = vmatprep.mubr.f32.mxu1 %v1375_v15  ;;  %1991 = vmatprep.mubr.f32.mxu0 %v1377_v16  ;;  %v3293_v4 = vpack.c.bf16 %v1575_v61, %v1574_v60  ;;  %v1577_v9 = vld [vmem:[#allocation11 + $0x5d8] sm:$0xff]  ;;  %v3295_v12 = vpack.c.bf16 %v1559_v6, %v1558_v5  ;;  %v3265_v16 = vpack.c.bf16 %v1545_v7, %v1544_v54  ;;  %v1532_v43 = vld [vmem:[#allocation11 + $0x470] sm:$0xff]  ;;  %v1630_v58 = vld [vmem:[#allocation11 + $0x780] sm:$0xff] }
 0x2ec   :  { %1922 = vmatmul.mubr.f32.vlgmr.msra.gmra.mrb[12].mxu1 %v1374_v21  ;;  %1992 = vmatmul.mubr.f32.vlgmr.msra.gmra.mrb[14].mxu0 %v1376_v22  ;;  %v1529_v15 = vld [vmem:[#allocation11 + $0x458] sm:$0xff]  ;;  %v1547_v21 = vld [vmem:[#allocation11 + $0x4e8] sm:$0xff]  ;;  %v1578_v22 = vld [vmem:[#allocation11 + $0x5e0] sm:$0xff]  ;;  %v607_v57 = vrot.slane %v3861_v27, %v3835_v56 }
 0x2ed   :  { %3248 = vmatpush3.bf16.msra.mxu1 %v3247_v17  ;;  %3280 = vmatpush3.bf16.msra.mxu0 %v3279_v18  ;;  %v3297_v17 = vpack.c.bf16 %v1577_v9, %v1576_v8  ;;  %v1560_v18 = vld [vmem:[#allocation11 + $0x550] sm:$0xff]  ;;  %v3269_v31 = vpack.c.bf16 %v1547_v21, %v1546_v20  ;;  %v1549_v37 = vld [vmem:[#allocation11 + $0x4f8] sm:$0xff]  ;;  %v1631_v59 = vld [vmem:[#allocation11 + $0x788] sm:$0xff] }
 0x2ee   :  { %3250 = vmatprep.subr.bf16.mxu1 %v3249_v23  ;;  %3282 = vmatprep.subr.bf16.mxu0 %v3281_v25  ;;  %v1579_v23 = vld [vmem:[#allocation11 + $0x5e8] sm:$0xff]  ;;  %v3267_v25 = vpack.c.bf16 %v1529_v15, %v1528_v13  ;;  %v3299_v26 = vpack.c.bf16 %v1561_v19, %v1560_v18  ;;  %v1533_v44 = vld [vmem:[#allocation11 + $0x478] sm:$0xff]  ;;  %v1564_v45 = vld [vmem:[#allocation11 + $0x570] sm:$0xff]  ;;  %v3341_v7 = vpack.c.bf16 %v1631_v59, %v1630_v58 }
 0x2ef   :  { %v3301_v11 = vpack.c.bf16 %v1579_v23, %v1578_v22  ;;  %v1565_v49 = vld [vmem:[#allocation11 + $0x578] sm:$0xff]  ;;  %v1582_v2 = vld [vmem:[#allocation11 + $0x600] sm:$0xff]  ;;  %v1615_v9 = vld [vmem:[#allocation11 + $0x708] sm:$0xff] }
 0x2f0   :  { %v1614_v8 = vld [vmem:[#allocation11 + $0x700] sm:$0xff]  ;;  %v1601_v15 = vld [vmem:[#allocation11 + $0x698] sm:$0xff]  ;;  %v1584_v22 = vld [vmem:[#allocation11 + $0x610] sm:$0xff] }
 0x2f1   :  { %3252 = vmatpush3.bf16.msra.mxu1 %v3251_v34  ;;  %3284 = vmatpush3.bf16.msra.mxu0 %v3283_v35  ;;  %v1562_v34 = vld [vmem:[#allocation11 + $0x560] sm:$0xff]  ;;  %v1563_v35 = vld [vmem:[#allocation11 + $0x568] sm:$0xff]  ;;  %v3343_v21 = vpack.c.bf16 %v1615_v9, %v1614_v8  ;;  %v1585_v23 = vld [vmem:[#allocation11 + $0x618] sm:$0xff] }
 0x2f2   :  { %3254 = vmatprep.subr.bf16.mxu1 %v3253_v38  ;;  %3286 = vmatprep.subr.bf16.mxu0 %v3285_v39  ;;  %v1580_v38 = vld [vmem:[#allocation11 + $0x5f0] sm:$0xff]  ;;  %v1581_v39 = vld [vmem:[#allocation11 + $0x5f8] sm:$0xff]  ;;  %v3303_v42 = vpack.c.bf16 %v1563_v35, %v1562_v34  ;;  %v1602_v34 = vld [vmem:[#allocation11 + $0x6a0] sm:$0xff] }
 0x2f3   :  { %v3305_v48 = vpack.c.bf16 %v1581_v39, %v1580_v38  ;;  %v1603_v35 = vld [vmem:[#allocation11 + $0x6a8] sm:$0xff]  ;;  %v3315_v38 = vpack.c.bf16 %v1585_v23, %v1584_v22  ;;  %v1622_v8 = vld [vmem:[#allocation11 + $0x740] sm:$0xff]  ;;  %v1624_v22 = vld [vmem:[#allocation11 + $0x750] sm:$0xff] }
 0x2f4   :  { %v1623_v9 = vld [vmem:[#allocation11 + $0x748] sm:$0xff]  ;;  %v1625_v23 = vld [vmem:[#allocation11 + $0x758] sm:$0xff] }
 0x2f5   :  { %3256 = vmatpush3.bf16.msra.mxu1 %v3255_v46  ;;  %3288 = vmatpush3.bf16.msra.mxu0 %v3287_v47  ;;  %v603_v46 = vrot.slane %v3861_v27, %v3827_v53  ;;  %v3273_v47 = vpack.c.bf16 %v1549_v37, %v1548_v36  ;;  %v1634_v36 = vld [vmem:[#allocation11 + $0x7a0] sm:$0xff]  ;;  %v1635_v37 = vld [vmem:[#allocation11 + $0x7a8] sm:$0xff] }
 0x2f6   :  { %3258 = vmatprep.subr.bf16.mxu1 %v3257_v50  ;;  %3290 = vmatprep.subr.bf16.mxu0 %v3289_v51  ;;  %v1598_v50 = vld [vmem:[#allocation11 + $0x680] sm:$0xff]  ;;  %v1599_v51 = vld [vmem:[#allocation11 + $0x688] sm:$0xff] }
 0x2f7   :  { %v3309_v0 = vpack.c.bf16 %v1599_v51, %v1598_v50 }
 0x2f9   :  { %3260 = vmatpush3.bf16.msra.mxu1 %v3259_v62  ;;  %3292 = vmatpush3.bf16.msra.mxu0 %v3291_v63  ;;  %v3275_v62 = vpack.c.bf16 %v1533_v44, %v1532_v43  ;;  %v3307_v63 = vpack.c.bf16 %v1565_v49, %v1564_v45  ;;  %v3349_v43 = vpack.c.bf16 %v1635_v37, %v1634_v36  ;;  %v1618_v44 = vld [vmem:[#allocation11 + $0x720] sm:$0xff]  ;;  %v1619_v45 = vld [vmem:[#allocation11 + $0x728] sm:$0xff]  ;;  %v1637_v49 = vld [vmem:[#allocation11 + $0x7b8] sm:$0xff] }
 0x2fa   :  { %3262 = vmatprep.subr.bf16.mxu1 %v3261_v3  ;;  %3294 = vmatprep.subr.bf16.mxu0 %v3293_v4  ;;  %v1583_v3 = vld [vmem:[#allocation11 + $0x608] sm:$0xff]  ;;  %v3351_v51 = vpack.c.bf16 %v1619_v45, %v1618_v44  ;;  %v611_v44 = vrot.slane %v3861_v27, %v578_v24  ;;  %v615_v24 = vrot.slane %v3861_v27, %v582_v32  ;;  %v1678_v32 = vld [vmem:[#allocation11 + $0x900] sm:$0xff] }
 0x2fb   :  { %v3311_v20 = vpack.c.bf16 %v1583_v3, %v1582_v2  ;;  %v1639_v2 = vld [vmem:[#allocation11 + $0x7c8] sm:$0xff] }
 0x2fd   :  { %3264 = vmatpush3.bf16.msra.mxu1 %v3263_v10  ;;  %3296 = vmatpush3.bf16.msra.mxu0 %v3295_v12  ;;  %v1600_v10 = vld [vmem:[#allocation11 + $0x690] sm:$0xff] }
 0x2fe   :  { %3266 = vmatprep.subr.bf16.mxu1 %v3265_v16  ;;  %3298 = vmatprep.subr.bf16.mxu0 %v3297_v17  ;;  %v1632_v16 = vld [vmem:[#allocation11 + $0x790] sm:$0xff]  ;;  %v1633_v17 = vld [vmem:[#allocation11 + $0x798] sm:$0xff]  ;;  %v3313_v28 = vpack.c.bf16 %v1601_v15, %v1600_v10 }
 0x2ff   :  { %v3345_v30 = vpack.c.bf16 %v1633_v17, %v1632_v16  ;;  %v1608_v10 = vld [vmem:[#allocation11 + $0x6d0] sm:$0xff]  ;;  %v1641_v15 = vld [vmem:[#allocation11 + $0x7d8] sm:$0xff]  ;;  %v3359_v17 = vpack.c.bf16 %v1623_v9, %v1622_v8 }
 0x301   :  { %3268 = vmatpush3.bf16.msra.mxu1 %v3267_v25  ;;  %3300 = vmatpush3.bf16.msra.mxu0 %v3299_v26 }
 0x302   :  { %3270 = vmatprep.subr.bf16.mxu1 %v3269_v31  ;;  %3302 = vmatprep.subr.bf16.mxu0 %v3301_v11  ;;  %v1616_v31 = vld [vmem:[#allocation11 + $0x710] sm:$0xff]  ;;  %v1617_v11 = vld [vmem:[#allocation11 + $0x718] sm:$0xff] }
 0x303   :  { %v3347_v39 = vpack.c.bf16 %v1617_v11, %v1616_v31  ;;  %v3363_v11 = vpack.c.bf16 %v1625_v23, %v1624_v22 }
 0x305   :  { %v1010_v60 = vpop.f32.mrb[4].mxu1  ;;  %v1081_v61 = vpop.f32.mrb[6].mxu0  ;;  %3272 = vmatpush3.bf16.msra.mxu1 %v3271_v41  ;;  %3304 = vmatpush3.bf16.msra.mxu0 %v3303_v42  ;;  %v1587_v41 = vld [vmem:[#allocation11 + $0x628] sm:$0xff]  ;;  %v3317_v42 = vpack.c.bf16 %v1603_v35, %v1602_v34  ;;  %v1594_v34 = vld [vmem:[#allocation11 + $0x660] sm:$0xff] }
 0x306   :  { %v1011_v4 = vadd.f32 %v1010_v60, %v595_v40  ;;  %v1082_v5 = vadd.f32 %v1081_v61, %v603_v46  ;;  %v1012_v6 = vpop.f32.mrb[5].mxu1  ;;  %v1083_v54 = vpop.f32.mrb[7].mxu0  ;;  %3274 = vmatprep.subr.bf16.mxu1 %v3273_v47  ;;  %3306 = vmatprep.subr.bf16.mxu0 %v3305_v48  ;;  %v1586_v40 = vld [vmem:[#allocation11 + $0x620] sm:$0xff]  ;;  %v1604_v46 = vld [vmem:[#allocation11 + $0x6b0] sm:$0xff]  ;;  %v1605_v47 = vld [vmem:[#allocation11 + $0x6b8] sm:$0xff] }
 0x307   :  { %v1013_v12 = vadd.f32 %v1012_v6, %v599_v52  ;;  %v1084_v13 = vadd.f32 %v1083_v54, %v607_v57  ;;  %v1636_v48 = vld [vmem:[#allocation11 + $0x7b0] sm:$0xff]  ;;  %v3319_v50 = vpack.c.bf16 %v1587_v41, %v1586_v40  ;;  %v1589_v57 = vld [vmem:[#allocation11 + $0x638] sm:$0xff]  ;;  %v3321_v58 = vpack.c.bf16 %v1605_v47, %v1604_v46  ;;  %v1591_v6 = vld [vmem:[#allocation11 + $0x648] sm:$0xff] }
 0x308   :  { %v1378_v25 = vmax.f32 %v1011_v4, 0.0  ;;  %v1380_v26 = vmax.f32 %v1082_v5, 0.0  ;;  %v1588_v52 = vld [vmem:[#allocation11 + $0x630] sm:$0xff]  ;;  %v3353_v59 = vpack.c.bf16 %v1637_v49, %v1636_v48  ;;  %v1621_v61 = vld [vmem:[#allocation11 + $0x738] sm:$0xff]  ;;  %v1590_v5 = vld [vmem:[#allocation11 + $0x640] sm:$0xff] }
 0x309   :  { %v1379_v18 = vmax.f32 %v1013_v12, 0.0  ;;  %v1381_v19 = vmax.f32 %v1084_v13, 0.0  ;;  %3276 = vmatpush3.bf16.msra.mxu1 %v3275_v62  ;;  %3308 = vmatpush3.bf16.msra.mxu0 %v3307_v63  ;;  %v1620_v60 = vld [vmem:[#allocation11 + $0x730] sm:$0xff]  ;;  %v1606_v62 = vld [vmem:[#allocation11 + $0x6c0] sm:$0xff]  ;;  %v1607_v63 = vld [vmem:[#allocation11 + $0x6c8] sm:$0xff]  ;;  %v3323_v3 = vpack.c.bf16 %v1589_v57, %v1588_v52  ;;  %v3327_v16 = vpack.c.bf16 %v1591_v6, %v1590_v5 }
 0x30a   :  { %3310 = vmatprep.subr.bf16.mxu1 %v3309_v0  ;;  %3342 = vmatprep.subr.bf16.mxu0 %v3341_v7  ;;  %v1638_v0 = vld [vmem:[#allocation11 + $0x7c0] sm:$0xff]  ;;  %v3355_v4 = vpack.c.bf16 %v1621_v61, %v1620_v60  ;;  %v3325_v54 = vpack.c.bf16 %v1607_v63, %v1606_v62  ;;  %v1609_v12 = vld [vmem:[#allocation11 + $0x6d8] sm:$0xff]  ;;  %v1640_v13 = vld [vmem:[#allocation11 + $0x7d0] sm:$0xff]  ;;  %v623_v60 = vrot.slane %v3861_v27, %v590_v33 }
 0x30b   :  { %2061 = vmatprep.mubr.f32.mxu1 %v1379_v18  ;;  %2131 = vmatprep.mubr.f32.mxu0 %v1381_v19  ;;  %v3357_v7 = vpack.c.bf16 %v1639_v2, %v1638_v0  ;;  %v1592_v18 = vld [vmem:[#allocation11 + $0x650] sm:$0xff]  ;;  %v1593_v19 = vld [vmem:[#allocation11 + $0x658] sm:$0xff]  ;;  %v1595_v35 = vld [vmem:[#allocation11 + $0x668] sm:$0xff] }
 0x30c   :  { %2062 = vmatmul.mubr.f32.vlgmr.msra.gmra.mrb[14].mxu1 %v1378_v25  ;;  %2132 = vmatmul.mubr.f32.vlgmr.msra.gmra.mrb[16].mxu0 %v1380_v26  ;;  %v1610_v25 = vld [vmem:[#allocation11 + $0x6e0] sm:$0xff]  ;;  %v1611_v26 = vld [vmem:[#allocation11 + $0x6e8] sm:$0xff]  ;;  %v3331_v31 = vpack.c.bf16 %v1593_v19, %v1592_v18  ;;  %v1612_v40 = vld [vmem:[#allocation11 + $0x6f0] sm:$0xff]  ;;  %v3335_v45 = vpack.c.bf16 %v1595_v35, %v1594_v34 }
 0x30d   :  { %3312 = vmatpush3.bf16.msra.mxu1 %v3311_v20  ;;  %3344 = vmatpush3.bf16.msra.mxu0 %v3343_v21  ;;  %v3329_v20 = vpack.c.bf16 %v1609_v12, %v1608_v10  ;;  %v3361_v21 = vpack.c.bf16 %v1641_v15, %v1640_v13  ;;  %v3333_v36 = vpack.c.bf16 %v1611_v26, %v1610_v25  ;;  %v1613_v41 = vld [vmem:[#allocation11 + $0x6f8] sm:$0xff]  ;;  %v1596_v47 = vld [vmem:[#allocation11 + $0x670] sm:$0xff]  ;;  %v1694_v61 = vld [vmem:[#allocation11 + $0x980] sm:$0xff] }
 0x30e   :  { %3314 = vmatprep.subr.bf16.mxu1 %v3313_v28  ;;  %3346 = vmatprep.subr.bf16.mxu0 %v3345_v30  ;;  %v1642_v28 = vld [vmem:[#allocation11 + $0x7e0] sm:$0xff]  ;;  %v1643_v30 = vld [vmem:[#allocation11 + $0x7e8] sm:$0xff]  ;;  %v1597_v48 = vld [vmem:[#allocation11 + $0x678] sm:$0xff] }
 0x30f   :  { %v3365_v37 = vpack.c.bf16 %v1643_v30, %v1642_v28  ;;  %v1628_v49 = vld [vmem:[#allocation11 + $0x770] sm:$0xff]  ;;  %v1629_v57 = vld [vmem:[#allocation11 + $0x778] sm:$0xff]  ;;  %v1695_v62 = vld [vmem:[#allocation11 + $0x988] sm:$0xff] }
 0x310   :  { %v3371_v2 = vpack.c.bf16 %v1629_v57, %v1628_v49  ;;  %v1647_v5 = vld [vmem:[#allocation11 + $0x808] sm:$0xff]  ;;  %v3405_v1 = vpack.c.bf16 %v1695_v62, %v1694_v61  ;;  %v1665_v12 = vld [vmem:[#allocation11 + $0x898] sm:$0xff]  ;;  %v1696_v13 = vld [vmem:[#allocation11 + $0x990] sm:$0xff] }
 0x311   :  { %3316 = vmatpush3.bf16.msra.mxu1 %v3315_v38  ;;  %3348 = vmatpush3.bf16.msra.mxu0 %v3347_v39  ;;  %v1626_v38 = vld [vmem:[#allocation11 + $0x760] sm:$0xff]  ;;  %v1627_v39 = vld [vmem:[#allocation11 + $0x768] sm:$0xff]  ;;  %v1697_v15 = vld [vmem:[#allocation11 + $0x998] sm:$0xff] }
 0x312   :  { %3318 = vmatprep.subr.bf16.mxu1 %v3317_v42  ;;  %3350 = vmatprep.subr.bf16.mxu0 %v3349_v43  ;;  %v1644_v42 = vld [vmem:[#allocation11 + $0x7f0] sm:$0xff]  ;;  %v1645_v43 = vld [vmem:[#allocation11 + $0x7f8] sm:$0xff]  ;;  %v3367_v46 = vpack.c.bf16 %v1627_v39, %v1626_v38  ;;  %v1679_v33 = vld [vmem:[#allocation11 + $0x908] sm:$0xff]  ;;  %v3409_v26 = vpack.c.bf16 %v1697_v15, %v1696_v13 }
 0x313   :  { %v3369_v52 = vpack.c.bf16 %v1645_v43, %v1644_v42  ;;  %v3407_v19 = vpack.c.bf16 %v1679_v33, %v1678_v32  ;;  %v1680_v28 = vld [vmem:[#allocation11 + $0x910] sm:$0xff]  ;;  %v1681_v30 = vld [vmem:[#allocation11 + $0x918] sm:$0xff]  ;;  %v1698_v34 = vld [vmem:[#allocation11 + $0x9a0] sm:$0xff] }
 0x314   :  { %v1699_v35 = vld [vmem:[#allocation11 + $0x9a8] sm:$0xff]  ;;  %v1650_v38 = vld [vmem:[#allocation11 + $0x820] sm:$0xff]  ;;  %v1688_v13 = vld [vmem:[#allocation11 + $0x950] sm:$0xff] }
 0x315   :  { %3320 = vmatpush3.bf16.msra.mxu1 %v3319_v50  ;;  %3352 = vmatpush3.bf16.msra.mxu0 %v3351_v51  ;;  %v619_v50 = vrot.slane %v3861_v27, %v586_v29  ;;  %v3337_v51 = vpack.c.bf16 %v1613_v41, %v1612_v40  ;;  %v3339_v29 = vpack.c.bf16 %v1597_v48, %v1596_v47  ;;  %v1664_v27 = vld [vmem:[#allocation11 + $0x890] sm:$0xff]  ;;  %v1651_v39 = vld [vmem:[#allocation11 + $0x828] sm:$0xff]  ;;  %v1682_v42 = vld [vmem:[#allocation11 + $0x920] sm:$0xff] }
 0x316   :  { %3322 = vmatprep.subr.bf16.mxu1 %v3321_v58  ;;  %3354 = vmatprep.subr.bf16.mxu0 %v3353_v59  ;;  %v1662_v58 = vld [vmem:[#allocation11 + $0x880] sm:$0xff]  ;;  %v1663_v59 = vld [vmem:[#allocation11 + $0x888] sm:$0xff]  ;;  %v3377_v25 = vpack.c.bf16 %v1665_v12, %v1664_v27  ;;  %v3413_v41 = vpack.c.bf16 %v1699_v35, %v1698_v34  ;;  %v1701_v47 = vld [vmem:[#allocation11 + $0x9b8] sm:$0xff]  ;;  %v3383_v48 = vpack.c.bf16 %v1651_v39, %v1650_v38 }
 0x317   :  { %v1683_v43 = vld [vmem:[#allocation11 + $0x928] sm:$0xff]  ;;  %v1702_v61 = vld [vmem:[#allocation11 + $0x9c0] sm:$0xff]  ;;  %v1656_v27 = vld [vmem:[#allocation11 + $0x850] sm:$0xff] }
 0x318   :  { %v3415_v49 = vpack.c.bf16 %v1683_v43, %v1682_v42  ;;  %v1703_v62 = vld [vmem:[#allocation11 + $0x9c8] sm:$0xff]  ;;  %v1689_v15 = vld [vmem:[#allocation11 + $0x958] sm:$0xff]  ;;  %v1708_v35 = vld [vmem:[#allocation11 + $0x9f0] sm:$0xff] }
 0x319   :  { %3324 = vmatpush3.bf16.msra.mxu1 %v3323_v3  ;;  %3356 = vmatpush3.bf16.msra.mxu0 %v3355_v4  ;;  %v3373_v3 = vpack.c.bf16 %v1663_v59, %v1662_v58  ;;  %v1646_v4 = vld [vmem:[#allocation11 + $0x800] sm:$0xff]  ;;  %v1684_v58 = vld [vmem:[#allocation11 + $0x930] sm:$0xff]  ;;  %v1685_v59 = vld [vmem:[#allocation11 + $0x938] sm:$0xff] }
 0x31a   :  { %3326 = vmatprep.subr.bf16.mxu1 %v3325_v54  ;;  %3358 = vmatprep.subr.bf16.mxu0 %v3357_v7  ;;  %v3375_v18 = vpack.c.bf16 %v1647_v5, %v1646_v4  ;;  %v3421_v4 = vpack.c.bf16 %v1703_v62, %v1702_v61  ;;  %v1686_v5 = vld [vmem:[#allocation11 + $0x940] sm:$0xff]  ;;  %v1677_v34 = vld [vmem:[#allocation11 + $0x8f8] sm:$0xff] }
 0x31d   :  { %3328 = vmatpush3.bf16.msra.mxu1 %v3327_v16  ;;  %3360 = vmatpush3.bf16.msra.mxu0 %v3359_v17 }
 0x31e   :  { %3330 = vmatprep.subr.bf16.mxu1 %v3329_v20  ;;  %3362 = vmatprep.subr.bf16.mxu0 %v3361_v21  ;;  %v1648_v20 = vld [vmem:[#allocation11 + $0x810] sm:$0xff]  ;;  %v1649_v21 = vld [vmem:[#allocation11 + $0x818] sm:$0xff] }
 0x321   :  { %3332 = vmatpush3.bf16.msra.mxu1 %v3331_v31  ;;  %3364 = vmatpush3.bf16.msra.mxu0 %v3363_v11  ;;  %v1666_v31 = vld [vmem:[#allocation11 + $0x8a0] sm:$0xff]  ;;  %v1667_v11 = vld [vmem:[#allocation11 + $0x8a8] sm:$0xff] }
 0x322   :  { %3334 = vmatprep.subr.bf16.mxu1 %v3333_v36  ;;  %3366 = vmatprep.subr.bf16.mxu0 %v3365_v37  ;;  %v3379_v36 = vpack.c.bf16 %v1649_v21, %v1648_v20  ;;  %v3411_v37 = vpack.c.bf16 %v1681_v30, %v1680_v28  ;;  %v3381_v40 = vpack.c.bf16 %v1667_v11, %v1666_v31  ;;  %v1690_v30 = vld [vmem:[#allocation11 + $0x960] sm:$0xff]  ;;  %v1691_v31 = vld [vmem:[#allocation11 + $0x968] sm:$0xff]  ;;  %v1676_v11 = vld [vmem:[#allocation11 + $0x8f0] sm:$0xff] }
 0x323   :  { %v3427_v21 = vpack.c.bf16 %v1689_v15, %v1688_v13  ;;  %v3431_v39 = vpack.c.bf16 %v1691_v31, %v1690_v30  ;;  %v3401_v42 = vpack.c.bf16 %v1677_v34, %v1676_v11 }
 0x325   :  { %v1152_v63 = vpop.f32.mrb[6].mxu1  ;;  %v1223_v0 = vpop.f32.mrb[8].mxu0  ;;  %3336 = vmatpush3.bf16.msra.mxu1 %v3335_v45  ;;  %3368 = vmatpush3.bf16.msra.mxu0 %v3367_v46  ;;  %v1669_v45 = vld [vmem:[#allocation11 + $0x8b8] sm:$0xff]  ;;  %v1700_v46 = vld [vmem:[#allocation11 + $0x9b0] sm:$0xff] }
 0x326   :  { %v1153_v6 = vadd.f32 %v1152_v63, %v611_v44  ;;  %v1224_v54 = vadd.f32 %v1223_v0, %v619_v50  ;;  %v1154_v7 = vpop.f32.mrb[7].mxu1  ;;  %v1225_v8 = vpop.f32.mrb[9].mxu0  ;;  %3338 = vmatprep.subr.bf16.mxu1 %v3337_v51  ;;  %3370 = vmatprep.subr.bf16.mxu0 %v3369_v52  ;;  %v1668_v44 = vld [vmem:[#allocation11 + $0x8b0] sm:$0xff]  ;;  %v1653_v51 = vld [vmem:[#allocation11 + $0x838] sm:$0xff]  ;;  %v3417_v57 = vpack.c.bf16 %v1701_v47, %v1700_v46 }
 0x327   :  { %v1155_v9 = vadd.f32 %v1154_v7, %v615_v24  ;;  %v1226_v10 = vadd.f32 %v1225_v8, %v623_v60  ;;  %v1652_v50 = vld [vmem:[#allocation11 + $0x830] sm:$0xff]  ;;  %v3385_v52 = vpack.c.bf16 %v1669_v45, %v1668_v44  ;;  %v1670_v24 = vld [vmem:[#allocation11 + $0x8c0] sm:$0xff]  ;;  %v1671_v60 = vld [vmem:[#allocation11 + $0x8c8] sm:$0xff]  ;;  %v3419_v0 = vpack.c.bf16 %v1685_v59, %v1684_v58 }
 0x328   :  { %v1382_v22 = vmax.f32 %v1153_v6, 0.0  ;;  %v1384_v23 = vmax.f32 %v1224_v54, 0.0  ;;  %v3387_v63 = vpack.c.bf16 %v1653_v51, %v1652_v50  ;;  %v1687_v6 = vld [vmem:[#allocation11 + $0x948] sm:$0xff]  ;;  %v1672_v54 = vld [vmem:[#allocation11 + $0x8d0] sm:$0xff]  ;;  %v1673_v7 = vld [vmem:[#allocation11 + $0x8d8] sm:$0xff] }
 0x329   :  { %v1383_v16 = vmax.f32 %v1155_v9, 0.0  ;;  %v1385_v17 = vmax.f32 %v1226_v10, 0.0  ;;  %3340 = vmatpush3.bf16.msra.mxu1 %v3339_v29  ;;  %3372 = vmatpush3.bf16.msra.mxu0 %v3371_v2  ;;  %v1654_v29 = vld [vmem:[#allocation11 + $0x840] sm:$0xff]  ;;  %v1655_v2 = vld [vmem:[#allocation11 + $0x848] sm:$0xff]  ;;  %v1704_v8 = vld [vmem:[#allocation11 + $0x9d0] sm:$0xff]  ;;  %v3423_v33 = vpack.c.bf16 %v1687_v6, %v1686_v5  ;;  %v3393_v10 = vpack.c.bf16 %v1673_v7, %v1672_v54 }
 0x32a   :  { %3374 = vmatprep.subr.bf16.mxu1 %v3373_v3  ;;  %3406 = vmatprep.subr.bf16.mxu0 %v3405_v1  ;;  %v3389_v3 = vpack.c.bf16 %v1671_v60, %v1670_v24  ;;  %v1705_v1 = vld [vmem:[#allocation11 + $0x9d8] sm:$0xff]  ;;  %v3391_v32 = vpack.c.bf16 %v1655_v2, %v1654_v29  ;;  %v1692_v45 = vld [vmem:[#allocation11 + $0x970] sm:$0xff] }
 0x32b   :  { %2201 = vmatprep.mubr.f32.mxu1 %v1383_v16  ;;  %2271 = vmatprep.mubr.f32.mxu0 %v1385_v17  ;;  %v1657_v9 = vld [vmem:[#allocation11 + $0x858] sm:$0xff]  ;;  %v3425_v12 = vpack.c.bf16 %v1705_v1, %v1704_v8  ;;  %v1674_v16 = vld [vmem:[#allocation11 + $0x8e0] sm:$0xff]  ;;  %v1675_v17 = vld [vmem:[#allocation11 + $0x8e8] sm:$0xff] }
 0x32c   :  { %2202 = vmatmul.mubr.f32.vlgmr.msra.gmra.mrb[16].mxu1 %v1382_v22  ;;  %2272 = vmatmul.mubr.f32.vlgmr.msra.gmra.mrb[18].mxu0 %v1384_v23  ;;  %v3395_v20 = vpack.c.bf16 %v1657_v9, %v1656_v27  ;;  %v556_v22 = vld [vmem:[#allocation10 + $0x10] sm:$0xf]  ;;  %v1658_v23 = vld [vmem:[#allocation11 + $0x860] sm:$0xff] }
 0x32d   :  { %3376 = vmatpush3.bf16.msra.mxu1 %v3375_v18  ;;  %3408 = vmatpush3.bf16.msra.mxu0 %v3407_v19  ;;  %v1706_v18 = vld [vmem:[#allocation11 + $0x9e0] sm:$0xff]  ;;  %v1707_v19 = vld [vmem:[#allocation11 + $0x9e8] sm:$0xff]  ;;  %v1661_v44 = vld [vmem:[#allocation11 + $0x878] sm:$0xff]  ;;  %v631_v47 = vrot.slane %v556_v22, %v3832_v55 }
 0x32e   :  { %3378 = vmatprep.subr.bf16.mxu1 %v3377_v25  ;;  %3410 = vmatprep.subr.bf16.mxu0 %v3409_v26  ;;  %v1659_v25 = vld [vmem:[#allocation11 + $0x868] sm:$0xff]  ;;  %v3397_v26 = vpack.c.bf16 %v1675_v17, %v1674_v16  ;;  %v3429_v28 = vpack.c.bf16 %v1707_v19, %v1706_v18  ;;  %v1693_v46 = vld [vmem:[#allocation11 + $0x978] sm:$0xff] }
 0x32f   :  { %v3399_v38 = vpack.c.bf16 %v1659_v25, %v1658_v23  ;;  %v3435_v51 = vpack.c.bf16 %v1693_v46, %v1692_v45 }
 0x331   :  { %3380 = vmatpush3.bf16.msra.mxu1 %v3379_v36  ;;  %3412 = vmatpush3.bf16.msra.mxu0 %v3411_v37  ;;  %v1709_v36 = vld [vmem:[#allocation11 + $0x9f8] sm:$0xff]  ;;  %v627_v37 = vrot.slane %v556_v22, %v3824_v14 }
 0x332   :  { %3382 = vmatprep.subr.bf16.mxu1 %v3381_v40  ;;  %3414 = vmatprep.subr.bf16.mxu0 %v3413_v41  ;;  %v1660_v40 = vld [vmem:[#allocation11 + $0x870] sm:$0xff]  ;;  %v635_v41 = vrot.slane %v556_v22, %v3827_v53  ;;  %v3433_v43 = vpack.c.bf16 %v1709_v36, %v1708_v35 }
 0x333   :  { %v3403_v14 = vpack.c.bf16 %v1661_v44, %v1660_v40 }
 0x335   :  { %3384 = vmatpush3.bf16.msra.mxu1 %v3383_v48  ;;  %3416 = vmatpush3.bf16.msra.mxu0 %v3415_v49  ;;  %v639_v48 = vrot.slane %v556_v22, %v3835_v56 }
 0x336   :  { %3386 = vmatprep.subr.bf16.mxu1 %v3385_v52  ;;  %3418 = vmatprep.subr.bf16.mxu0 %v3417_v57 }
 0x339   :  { %3388 = vmatpush3.bf16.msra.mxu1 %v3387_v63  ;;  %3420 = vmatpush3.bf16.msra.mxu0 %v3419_v0  ;;  %v2439_v0 = vld [vmem:[#allocation13] ss:$0 sm:$0xff] }
 0x33a   :  { %3390 = vmatprep.subr.bf16.mxu1 %v3389_v3  ;;  %3422 = vmatprep.subr.bf16.mxu0 %v3421_v4 }
 0x33d   :  { %3392 = vmatpush3.bf16.msra.mxu1 %v3391_v32  ;;  %3424 = vmatpush3.bf16.msra.mxu0 %v3423_v33 }
 0x33e   :  { %3394 = vmatprep.subr.bf16.mxu1 %v3393_v10  ;;  %3426 = vmatprep.subr.bf16.mxu0 %v3425_v12 }
 0x341   :  { %3396 = vmatpush3.bf16.msra.mxu1 %v3395_v20  ;;  %3428 = vmatpush3.bf16.msra.mxu0 %v3427_v21 }
 0x342   :  { %3398 = vmatprep.subr.bf16.mxu1 %v3397_v26  ;;  %3430 = vmatprep.subr.bf16.mxu0 %v3429_v28 }
 0x345   :  { %v1294_v49 = vpop.f32.mrb[8].mxu1  ;;  %v1365_v50 = vpop.f32.mrb[10].mxu0  ;;  %3400 = vmatpush3.bf16.msra.mxu1 %v3399_v38  ;;  %3432 = vmatpush3.bf16.msra.mxu0 %v3431_v39 }
 0x346   :  { %v1295_v52 = vadd.f32 %v1294_v49, %v627_v37  ;;  %v1366_v57 = vadd.f32 %v1365_v50, %v635_v41  ;;  %v1296_v58 = vpop.f32.mrb[9].mxu1  ;;  %v1367_v59 = vpop.f32.mrb[11].mxu0  ;;  %3402 = vmatprep.subr.bf16.mxu1 %v3401_v42  ;;  %3434 = vmatprep.subr.bf16.mxu0 %v3433_v43 }
 0x347   :  { %v1297_v53 = vadd.f32 %v1296_v58, %v631_v47  ;;  %v1368_v24 = vadd.f32 %v1367_v59, %v639_v48 }
 0x348   :  { %v1386_v55 = vmax.f32 %v1295_v52, 0.0  ;;  %v1388_v56 = vmax.f32 %v1366_v57, 0.0 }
 0x349   :  { %v1387_v60 = vmax.f32 %v1297_v53, 0.0  ;;  %v1389_v61 = vmax.f32 %v1368_v24, 0.0  ;;  %3404 = vmatpush3.bf16.msra.mxu1 %v3403_v14  ;;  %3436 = vmatpush3.bf16.msra.mxu0 %v3435_v51 }
 0x34b   :  { %2341 = vmatprep.mubr.f32.mxu1 %v1387_v60  ;;  %2411 = vmatprep.mubr.f32.mxu0 %v1389_v61 }
 0x34c   :  { %2342 = vmatmul.mubr.f32.vlgmr.msra.gmra.mrb[18].mxu1 %v1386_v55  ;;  %2412 = vmatmul.mubr.f32.vlgmr.msra.gmra.mrb[20].mxu0 %v1388_v56 }
 0x39f   :  { %v2474_v62 = vpop.f32.mrb[10].mxu1  ;;  %v2509_v63 = vpop.f32.mrb[12].mxu0 }
 0x3a0   :  { %v2475_v29 = vpop.f32.mrb[11].mxu1  ;;  %v2510_v2 = vpop.f32.mrb[13].mxu0 }
 0x3a1   :  { %v2476_v3 = vadd.f32 %v2475_v29, %v2474_v62  ;;  %v2511_v4 = vadd.f32 %v2510_v2, %v2509_v63 }
 0x3a3   :  { %v1784_v5 = vadd.f32 %v2476_v3, %v2439_v0 }
 0x3a5   :  { %v1854_v6 = vadd.f32 %v2511_v4, %v1784_v5 }
 0x3bf   :  { %v2544_v54 = vpop.f32.mrb[12].mxu1  ;;  %v2579_v7 = vpop.f32.mrb[14].mxu0 }
 0x3c0   :  { %v2545_v8 = vpop.f32.mrb[13].mxu1  ;;  %v2580_v1 = vpop.f32.mrb[15].mxu0 }
 0x3c1   :  { %v2546_v32 = vadd.f32 %v2545_v8, %v2544_v54  ;;  %v2581_v33 = vadd.f32 %v2580_v1, %v2579_v7 }
 0x3c3   :  { %v1924_v27 = vadd.f32 %v2546_v32, %v1854_v6 }
 0x3c5   :  { %v1994_v9 = vadd.f32 %v2581_v33, %v1924_v27 }
 0x3df   :  { %v2614_v10 = vpop.f32.mrb[14].mxu1  ;;  %v2649_v12 = vpop.f32.mrb[16].mxu0 }
 0x3e0   :  { %v2615_v13 = vpop.f32.mrb[15].mxu1  ;;  %v2650_v15 = vpop.f32.mrb[17].mxu0 }
 0x3e1   :  { %v2616_v16 = vadd.f32 %v2615_v13, %v2614_v10  ;;  %v2651_v17 = vadd.f32 %v2650_v15, %v2649_v12 }
 0x3e3   :  { %v2064_v18 = vadd.f32 %v2616_v16, %v1994_v9 }
 0x3e5   :  { %v2134_v19 = vadd.f32 %v2651_v17, %v2064_v18 }
 0x3ff   :  { %v2684_v20 = vpop.f32.mrb[16].mxu1  ;;  %v2719_v21 = vpop.f32.mrb[18].mxu0 }
 0x400   :  { %v2685_v22 = vpop.f32.mrb[17].mxu1  ;;  %v2720_v23 = vpop.f32.mrb[19].mxu0 }
 0x401   :  { %v2686_v25 = vadd.f32 %v2685_v22, %v2684_v20  ;;  %v2721_v26 = vadd.f32 %v2720_v23, %v2719_v21 }
 0x403   :  { %v2204_v28 = vadd.f32 %v2686_v25, %v2134_v19 }
 0x405   :  { %v2274_v30 = vadd.f32 %v2721_v26, %v2204_v28 }
 0x41f   :  { %v2754_v31 = vpop.f32.mrb[18].mxu1  ;;  %v2789_v11 = vpop.f32.mrb[20].mxu0 }
 0x420   :  { %v2755_v34 = vpop.f32.mrb[19].mxu1  ;;  %v2790_v35 = vpop.f32.mrb[21].mxu0 }
 0x421   :  { %v2756_v36 = vadd.f32 %v2755_v34, %v2754_v31  ;;  %v2791_v37 = vadd.f32 %v2790_v35, %v2789_v11 }
 0x423   :  { %v2344_v38 = vadd.f32 %v2756_v36, %v2274_v30 }
 0x425   :  { %v2414_v39 = vadd.f32 %v2791_v37, %v2344_v38 }
 0x427   :  { %2417 = vst [vmem:[#allocation14] sm:$0x3] %v2414_v39 }
 0x428   :  { %3618 = shalt.err (!%p3615_p4)
}
 0x429   :  { %s3619_s27 = scalar_lea.hbm %s3906_s7, 32 }
 0x42a   :  { %p3620_p5 = scmp.ne.s32.totalorder %s3906_s7, %s3619_s27  ;;  %p3623_p6 = scmp.lt.u32.totalorder %s3619_s27, %s3906_s7 }
 0x42c   :  { %p3625_p7 = pnand %p3623_p6, %p3620_p5 }
 0x42e   :  { %3628 = shalt.err (!%p3625_p7)
}
 0x42f   :  { %2427 = dma.vmem_to_hbm [thread:$0]  %s2425_s14, 32, %s3906_s7, [#allocation4]  }
 0x430   :  { %3637 = dma.done.wait [#allocation4], 32  }
 0x431   :  { %3638 = vsyncadd [#allocation4], 4294967264 }
 0x432   :  { %2431 = vsyncpa [#allocation3], 1 }
 0x433   :  { %2432 = vsyncpa [#allocation6], 1 }
 0x434   :  { %2433 = vsyncpa [#allocation9], 1 }
 0x435   :  { %2434 = vsyncpa [#allocation12], 1 }
 0x436   :  { %2435 = vsyncpa [#allocation4], 1 }

</bundles_post_ra>
